<compile_context>
chip_gen: v7x
topology: tpu7x:2x2x1
jax: 0.10.0
libtpu: 0.0.40
codegen_flags: <defaults>
</compile_context>

<pallas_src>
import functools

import jax
import jax.numpy as jnp
from jax.experimental import pallas as pl
from jax.experimental.pallas import tpu as pltpu

_LANE = 128


def _round_up(a, b):
    return (a + b - 1) // b * b


def _sublane(itemsize):
    # Second-minor VMEM tile size: 8 for 4-byte, 16 for 2-byte, 32 for 1-byte.
    return max(8, 32 // max(1, itemsize))


def _vmem_params():
    """(vmem_limit_bytes, per-step VMEM budget), generation aware."""
    try:
        info = pltpu.get_tpu_info()
        cap = int(getattr(info, "vmem_capacity_bytes", 64 << 20))
    except Exception:
        cap = 64 << 20                      # conservative fallback (v7x-class)
    if cap <= (64 << 20):
        # v7x: 64 MiB per TensorCore -> leave headroom for double buffering.
        return 40 << 20, 6 << 20
    # v5e / v6e: 128 MiB VMEM -> bigger tiles amortize per-step overhead.
    return 80 << 20, 24 << 20


def _select_tiles(n, ho, wo, wp, kh, kw, stride, cin, cout,
                  in_bytes, out_bytes, budget):
    """Pick (batch tile bt, row tile th, #row tiles nt) under a per-step VMEM
    budget while keeping >= 2 grid steps when possible (v7x has 2 TCs)."""
    in_sub, out_sub = _sublane(in_bytes), _sublane(out_bytes)

    def footprint(bt, th):
        rows_in = (th - 1) * stride + kh
        # VMEM tiles pad the minor dim to 128 lanes and the 2nd-minor to the
        # sublane count -- count padded sizes (review: previous estimate
        # undercounted real VMEM).
        x_blk = bt * rows_in * _round_up(wp, in_sub) * _round_up(cin, _LANE) * in_bytes
        o_blk = bt * th * _round_up(wo, out_sub) * _round_up(cout, _LANE) * out_bytes
        w_blk = kh * kw * _round_up(cin, in_sub) * _round_up(cout, _LANE) * in_bytes
        # In-kernel temporaries (tap slices + f32 accumulator), 2x safety.
        tap = bt * th * wo * _round_up(cin, _LANE) * in_bytes
        acc = bt * th * wo * _round_up(cout, _LANE) * 4
        temps = 2 * (2 * tap + acc)
        return 2 * (x_blk + o_blk + w_blk) + temps   # x/w/o double-buffered

    # Full-height row tiles whenever they fit (zero halo re-reads); otherwise
    # halve until they do (halo windows are then read via pl.Element).
    th = ho
    while th > 8 and footprint(1, th) > budget:
        th = -(-th // 2)
    nt = -(-ho // th)

    # Grow the batch tile only while it still leaves >= 2 grid steps and fits.
    bt = 1
    for cand in (8, 4, 2):
        if (cand <= n and n % cand == 0 and (n // cand) * nt >= 2
                and footprint(cand, th) <= budget):
            bt = cand
            break

    # If the grid collapsed to a single step, split rows once (v7x: 2 TCs).
    if (n // bt) * nt < 2 and th >= 16:
        th = -(-th // 2)
        nt = -(-ho // th)
    return bt, th, nt


def _conv_relu_kernel(x_ref, w_ref, o_ref, *, kh, kw, stride, th, wo):
    """One (batch-tile, row-tile) block per grid step.

    x_ref: (bt, rows_in, Wp, Cin)   padded input rows incl. conv halo (VMEM)
    w_ref: (KH*KW, Cin, Cout)       per-tap weight matrices (VMEM, tiny)
    o_ref: (bt, th, Wo, Cout)
    """
    bt = x_ref.shape[0]
    cin = x_ref.shape[-1]
    cout = w_ref.shape[-1]
    w = w_ref[...]                              # (KH*KW, Cin, Cout)

    # Per-tap MXU matmuls accumulated in f32 -- no im2col patches buffer, so
    # VMEM live ranges stay small (on v7x the MRB accumulates in place).
    acc = None
    for i in range(kh):
        for j in range(kw):
            if stride == 1:
                tap = x_ref[:, i:i + th, j:j + wo, :]
            else:
                # Load the dense window and decimate; double-strided pl.ds on
                # a multi-dim VMEM ref is not relied upon (review concern).
                win = x_ref[:, i:i + (th - 1) * stride + 1,
                            j:j + (wo - 1) * stride + 1, :]
                tap = win[:, ::stride, ::stride, :]
            tap2d = tap.reshape(bt * th * wo, cin)
            part = jnp.dot(tap2d, w[i * kw + j],
                           preferred_element_type=jnp.float32)
            acc = part if acc is None else acc + part

    out = jnp.maximum(acc, 0.0)                 # fused ReLU in f32
    o_ref[...] = out.reshape(bt, th, wo, cout).astype(o_ref.dtype)


def conv_relu(x_nchw, weight_oihw, *, stride=1, pad=1,
              compute_dtype=jnp.bfloat16):
    """F.relu(F.conv2d(x, w, bias=None, stride, padding=pad)), NCHW interface.

    compute_dtype: MXU input dtype (accumulation is always f32).  bf16 default
    (2-3x MXU throughput + half the input/weight DMA bytes); pass jnp.float32
    for exact-f32 semantics.
    """
    n, cin, h, w_sp = x_nchw.shape
    cout, cin_w, kh, kw = weight_oihw.shape
    assert cin == cin_w, (cin, cin_w)

    ho = (h + 2 * pad - kh) // stride + 1
    wo = (w_sp + 2 * pad - kw) // stride + 1
    hp, wp = h + 2 * pad, w_sp + 2 * pad

    cdtype = jnp.dtype(compute_dtype)
    odtype = jnp.dtype(x_nchw.dtype)

    vmem_limit, step_budget = _vmem_params()
    bt, th, nt = _select_tiles(n, ho, wo, wp, kh, kw, stride, cin, cout,
                               cdtype.itemsize, odtype.itemsize, step_budget)
    rows_in = (th - 1) * stride + kh            # input rows per tile (+ halo)
    ho_pad = nt * th
    h_need = (ho_pad - 1) * stride + kh
    extra_h = max(0, h_need - hp)

    # Layout glue required by the NCHW module interface: NHWC + spatial zero
    # pad + dtype cast.  No channel padding -- HBM stays at real Cin/Cout.
    # (Accepting/returning NHWC directly would drop these two small passes.)
    x_nhwc = jnp.transpose(x_nchw, (0, 2, 3, 1)).astype(cdtype)
    x_pad = jnp.pad(x_nhwc, ((0, 0), (pad, pad + extra_h), (pad, pad), (0, 0)))

    # Weight: OIHW -> (KH*KW, Cin, Cout) per-tap matrices.
    w_taps = jnp.transpose(weight_oihw, (2, 3, 1, 0)).astype(cdtype)
    w_taps = w_taps.reshape(kh * kw, cin, cout)

    if nt == 1:
        # Whole (padded) image height per step: plain blocked window, no halo
        # duplication, no extra HBM pass.
        row_dim = rows_in
        x_index_map = lambda b, r: (b, 0, 0, 0)
    else:
        # Overlapping halo row windows read straight from x_pad via
        # element-offset indexing (replaces the old stacked halo slab).
        row_dim = pl.Element(rows_in)
        x_index_map = lambda b, r: (b, r * th * stride, 0, 0)

    kernel = functools.partial(
        _conv_relu_kernel, kh=kh, kw=kw, stride=stride, th=th, wo=wo)

    out_nhwc = pl.pallas_call(
        kernel,
        out_shape=jax.ShapeDtypeStruct((n, ho_pad, wo, cout), odtype),
        grid_spec=pltpu.PrefetchScalarGridSpec(
            num_scalar_prefetch=0,
            grid=(n // bt, nt),
            in_specs=[
                pl.BlockSpec((bt, row_dim, wp, cin), x_index_map),
                # Tiny weight, constant index map (stays resident).  For
                # large-channel configs this is where a Cout grid axis would
                # be added to keep the weight/output blocks VMEM-bounded.
                pl.BlockSpec((kh * kw, cin, cout), lambda b, r: (0, 0, 0)),
            ],
            out_specs=pl.BlockSpec((bt, th, wo, cout),
                                   lambda b, r: (b, r, 0, 0)),
        ),
        compiler_params=pltpu.CompilerParams(
            dimension_semantics=("parallel", "parallel"),
            vmem_limit_bytes=vmem_limit),
    )(x_pad, w_taps)

    if ho_pad != ho:
        out_nhwc = out_nhwc[:, :ho]
    return jnp.transpose(out_nhwc, (0, 3, 1, 2))


if __name__ == "__main__":
    key = jax.random.PRNGKey(0)
    k_x, k_w = jax.random.split(key)

    # ConvReLU(in_channels=4, out_channels=8, kernel_size=3, stride=1, pad=1)
    N, CIN, H, W = 2, 4, 16, 16
    COUT, KH, KW = 8, 3, 3

    x = jax.random.normal(k_x, (N, CIN, H, W), dtype=jnp.float32)
    weight = jax.random.normal(k_w, (COUT, CIN, KH, KW), dtype=jnp.float32) * 0.1

    # Reference: XLA conv + relu.
    ref = jax.lax.conv_general_dilated(
        x, weight, window_strides=(1, 1), padding=((1, 1), (1, 1)),
        dimension_numbers=("NCHW", "OIHW", "NCHW"))
    ref = jnp.maximum(ref, 0.0)

    # Default path: bf16 MXU inputs with f32 accumulation.
    out = conv_relu(x, weight, stride=1, pad=1)
    jax.block_until_ready(out)
    assert out.shape == (N, COUT, H, W), out.shape
    assert jnp.allclose(out, ref, atol=5e-2, rtol=5e-2)

    # f32 compute path (matches the module up to MXU summation order and the
    # XLA reference's default matmul precision).
    out_f32 = conv_relu(x, weight, stride=1, pad=1, compute_dtype=jnp.float32)
    jax.block_until_ready(out_f32)
    assert out_f32.shape == (N, COUT, H, W), out_f32.shape
    assert jnp.allclose(out_f32, ref, atol=1e-2, rtol=1e-2)

    print("KERNEL_OK")
</pallas_src>

<mosaic_0001>
module attributes {stable_mosaic.version = 11 : i64} {
  func.func @_conv_relu_kernel(%arg0: i32, %arg1: i32, %arg2: memref<1x18x18x4xbf16, #tpu.memory_space<vmem>>, %arg3: memref<9x4x8xbf16, #tpu.memory_space<vmem>>, %arg4: memref<1x16x16x8xf32, #tpu.memory_space<vmem>>) attributes {dimension_semantics = [#tpu.dimension_semantics<parallel>, #tpu.dimension_semantics<parallel>], iteration_bounds = array<i64: 2, 1>, scalar_prefetch = 0 : i64, scratch_operands = 0 : i64, tpu.core_type = #tpu.core_type<tc>, window_params = [{transform_indices = @transform_0, window_bounds = array<i64: 1, 18, 18, 4>}, {pipeline_mode = #tpu.pipeline_mode<synchronous>, transform_indices = @transform_1, window_bounds = array<i64: 9, 4, 8>}, {transform_indices = @transform_2, window_bounds = array<i64: 1, 16, 16, 8>}]} {
    %c0 = arith.constant 0 : index
    %c0_0 = arith.constant 0 : index
    %c0_1 = arith.constant 0 : index
    %0 = vector.load %arg3[%c0, %c0_0, %c0_1] : memref<9x4x8xbf16, #tpu.memory_space<vmem>>, vector<9x4x8xbf16>
    %c0_2 = arith.constant 0 : index
    %c0_3 = arith.constant 0 : index
    %c0_4 = arith.constant 0 : index
    %c0_5 = arith.constant 0 : index
    %1 = vector.load %arg2[%c0_2, %c0_3, %c0_4, %c0_5] : memref<1x18x18x4xbf16, #tpu.memory_space<vmem>>, vector<1x16x16x4xbf16>
    %2 = vector.shape_cast %1 : vector<1x16x16x4xbf16> to vector<256x4xbf16>
    %3 = vector.extract_strided_slice %0 {offsets = [0, 0, 0], sizes = [1, 4, 8], strides = [1, 1, 1]} : vector<9x4x8xbf16> to vector<1x4x8xbf16>
    %4 = vector.shape_cast %3 : vector<1x4x8xbf16> to vector<4x8xbf16>
    %cst = arith.constant dense<0.000000e+00> : vector<256x8xf32>
    %5 = tpu.matmul %2, %4, %cst {dimension_numbers = #tpu.dot_dimension_numbers<[1], [0], [0], [1], [0, 0, 1, 1], [], []>} : vector<256x4xbf16>, vector<4x8xbf16>, vector<256x8xf32> -> vector<256x8xf32>
    %c0_6 = arith.constant 0 : index
    %c0_7 = arith.constant 0 : index
    %c1 = arith.constant 1 : index
    %c0_8 = arith.constant 0 : index
    %6 = vector.load %arg2[%c0_6, %c0_7, %c1, %c0_8] : memref<1x18x18x4xbf16, #tpu.memory_space<vmem>>, vector<1x16x16x4xbf16>
    %7 = vector.shape_cast %6 : vector<1x16x16x4xbf16> to vector<256x4xbf16>
    %8 = vector.extract_strided_slice %0 {offsets = [1, 0, 0], sizes = [1, 4, 8], strides = [1, 1, 1]} : vector<9x4x8xbf16> to vector<1x4x8xbf16>
    %9 = vector.shape_cast %8 : vector<1x4x8xbf16> to vector<4x8xbf16>
    %cst_9 = arith.constant dense<0.000000e+00> : vector<256x8xf32>
    %10 = tpu.matmul %7, %9, %cst_9 {dimension_numbers = #tpu.dot_dimension_numbers<[1], [0], [0], [1], [0, 0, 1, 1], [], []>} : vector<256x4xbf16>, vector<4x8xbf16>, vector<256x8xf32> -> vector<256x8xf32>
    %11 = arith.addf %5, %10 : vector<256x8xf32>
    %c0_10 = arith.constant 0 : index
    %c0_11 = arith.constant 0 : index
    %c2 = arith.constant 2 : index
    %c0_12 = arith.constant 0 : index
    %12 = vector.load %arg2[%c0_10, %c0_11, %c2, %c0_12] : memref<1x18x18x4xbf16, #tpu.memory_space<vmem>>, vector<1x16x16x4xbf16>
    %13 = vector.shape_cast %12 : vector<1x16x16x4xbf16> to vector<256x4xbf16>
    %14 = vector.extract_strided_slice %0 {offsets = [2, 0, 0], sizes = [1, 4, 8], strides = [1, 1, 1]} : vector<9x4x8xbf16> to vector<1x4x8xbf16>
    %15 = vector.shape_cast %14 : vector<1x4x8xbf16> to vector<4x8xbf16>
    %cst_13 = arith.constant dense<0.000000e+00> : vector<256x8xf32>
    %16 = tpu.matmul %13, %15, %cst_13 {dimension_numbers = #tpu.dot_dimension_numbers<[1], [0], [0], [1], [0, 0, 1, 1], [], []>} : vector<256x4xbf16>, vector<4x8xbf16>, vector<256x8xf32> -> vector<256x8xf32>
    %17 = arith.addf %11, %16 : vector<256x8xf32>
    %c0_14 = arith.constant 0 : index
    %c1_15 = arith.constant 1 : index
    %c0_16 = arith.constant 0 : index
    %c0_17 = arith.constant 0 : index
    %18 = vector.load %arg2[%c0_14, %c1_15, %c0_16, %c0_17] : memref<1x18x18x4xbf16, #tpu.memory_space<vmem>>, vector<1x16x16x4xbf16>
    %19 = vector.shape_cast %18 : vector<1x16x16x4xbf16> to vector<256x4xbf16>
    %20 = vector.extract_strided_slice %0 {offsets = [3, 0, 0], sizes = [1, 4, 8], strides = [1, 1, 1]} : vector<9x4x8xbf16> to vector<1x4x8xbf16>
    %21 = vector.shape_cast %20 : vector<1x4x8xbf16> to vector<4x8xbf16>
    %cst_18 = arith.constant dense<0.000000e+00> : vector<256x8xf32>
    %22 = tpu.matmul %19, %21, %cst_18 {dimension_numbers = #tpu.dot_dimension_numbers<[1], [0], [0], [1], [0, 0, 1, 1], [], []>} : vector<256x4xbf16>, vector<4x8xbf16>, vector<256x8xf32> -> vector<256x8xf32>
    %23 = arith.addf %17, %22 : vector<256x8xf32>
    %c0_19 = arith.constant 0 : index
    %c1_20 = arith.constant 1 : index
    %c1_21 = arith.constant 1 : index
    %c0_22 = arith.constant 0 : index
    %24 = vector.load %arg2[%c0_19, %c1_20, %c1_21, %c0_22] : memref<1x18x18x4xbf16, #tpu.memory_space<vmem>>, vector<1x16x16x4xbf16>
    %25 = vector.shape_cast %24 : vector<1x16x16x4xbf16> to vector<256x4xbf16>
    %26 = vector.extract_strided_slice %0 {offsets = [4, 0, 0], sizes = [1, 4, 8], strides = [1, 1, 1]} : vector<9x4x8xbf16> to vector<1x4x8xbf16>
    %27 = vector.shape_cast %26 : vector<1x4x8xbf16> to vector<4x8xbf16>
    %cst_23 = arith.constant dense<0.000000e+00> : vector<256x8xf32>
    %28 = tpu.matmul %25, %27, %cst_23 {dimension_numbers = #tpu.dot_dimension_numbers<[1], [0], [0], [1], [0, 0, 1, 1], [], []>} : vector<256x4xbf16>, vector<4x8xbf16>, vector<256x8xf32> -> vector<256x8xf32>
    %29 = arith.addf %23, %28 : vector<256x8xf32>
    %c0_24 = arith.constant 0 : index
    %c1_25 = arith.constant 1 : index
    %c2_26 = arith.constant 2 : index
    %c0_27 = arith.constant 0 : index
    %30 = vector.load %arg2[%c0_24, %c1_25, %c2_26, %c0_27] : memref<1x18x18x4xbf16, #tpu.memory_space<vmem>>, vector<1x16x16x4xbf16>
    %31 = vector.shape_cast %30 : vector<1x16x16x4xbf16> to vector<256x4xbf16>
    %32 = vector.extract_strided_slice %0 {offsets = [5, 0, 0], sizes = [1, 4, 8], strides = [1, 1, 1]} : vector<9x4x8xbf16> to vector<1x4x8xbf16>
    %33 = vector.shape_cast %32 : vector<1x4x8xbf16> to vector<4x8xbf16>
    %cst_28 = arith.constant dense<0.000000e+00> : vector<256x8xf32>
    %34 = tpu.matmul %31, %33, %cst_28 {dimension_numbers = #tpu.dot_dimension_numbers<[1], [0], [0], [1], [0, 0, 1, 1], [], []>} : vector<256x4xbf16>, vector<4x8xbf16>, vector<256x8xf32> -> vector<256x8xf32>
    %35 = arith.addf %29, %34 : vector<256x8xf32>
    %c0_29 = arith.constant 0 : index
    %c2_30 = arith.constant 2 : index
    %c0_31 = arith.constant 0 : index
    %c0_32 = arith.constant 0 : index
    %36 = vector.load %arg2[%c0_29, %c2_30, %c0_31, %c0_32] : memref<1x18x18x4xbf16, #tpu.memory_space<vmem>>, vector<1x16x16x4xbf16>
    %37 = vector.shape_cast %36 : vector<1x16x16x4xbf16> to vector<256x4xbf16>
    %38 = vector.extract_strided_slice %0 {offsets = [6, 0, 0], sizes = [1, 4, 8], strides = [1, 1, 1]} : vector<9x4x8xbf16> to vector<1x4x8xbf16>
    %39 = vector.shape_cast %38 : vector<1x4x8xbf16> to vector<4x8xbf16>
    %cst_33 = arith.constant dense<0.000000e+00> : vector<256x8xf32>
    %40 = tpu.matmul %37, %39, %cst_33 {dimension_numbers = #tpu.dot_dimension_numbers<[1], [0], [0], [1], [0, 0, 1, 1], [], []>} : vector<256x4xbf16>, vector<4x8xbf16>, vector<256x8xf32> -> vector<256x8xf32>
    %41 = arith.addf %35, %40 : vector<256x8xf32>
    %c0_34 = arith.constant 0 : index
    %c2_35 = arith.constant 2 : index
    %c1_36 = arith.constant 1 : index
    %c0_37 = arith.constant 0 : index
    %42 = vector.load %arg2[%c0_34, %c2_35, %c1_36, %c0_37] : memref<1x18x18x4xbf16, #tpu.memory_space<vmem>>, vector<1x16x16x4xbf16>
    %43 = vector.shape_cast %42 : vector<1x16x16x4xbf16> to vector<256x4xbf16>
    %44 = vector.extract_strided_slice %0 {offsets = [7, 0, 0], sizes = [1, 4, 8], strides = [1, 1, 1]} : vector<9x4x8xbf16> to vector<1x4x8xbf16>
    %45 = vector.shape_cast %44 : vector<1x4x8xbf16> to vector<4x8xbf16>
    %cst_38 = arith.constant dense<0.000000e+00> : vector<256x8xf32>
    %46 = tpu.matmul %43, %45, %cst_38 {dimension_numbers = #tpu.dot_dimension_numbers<[1], [0], [0], [1], [0, 0, 1, 1], [], []>} : vector<256x4xbf16>, vector<4x8xbf16>, vector<256x8xf32> -> vector<256x8xf32>
    %47 = arith.addf %41, %46 : vector<256x8xf32>
    %c0_39 = arith.constant 0 : index
    %c2_40 = arith.constant 2 : index
    %c2_41 = arith.constant 2 : index
    %c0_42 = arith.constant 0 : index
    %48 = vector.load %arg2[%c0_39, %c2_40, %c2_41, %c0_42] : memref<1x18x18x4xbf16, #tpu.memory_space<vmem>>, vector<1x16x16x4xbf16>
    %49 = vector.shape_cast %48 : vector<1x16x16x4xbf16> to vector<256x4xbf16>
    %50 = vector.extract_strided_slice %0 {offsets = [8, 0, 0], sizes = [1, 4, 8], strides = [1, 1, 1]} : vector<9x4x8xbf16> to vector<1x4x8xbf16>
    %51 = vector.shape_cast %50 : vector<1x4x8xbf16> to vector<4x8xbf16>
    %cst_43 = arith.constant dense<0.000000e+00> : vector<256x8xf32>
    %52 = tpu.matmul %49, %51, %cst_43 {dimension_numbers = #tpu.dot_dimension_numbers<[1], [0], [0], [1], [0, 0, 1, 1], [], []>} : vector<256x4xbf16>, vector<4x8xbf16>, vector<256x8xf32> -> vector<256x8xf32>
    %53 = arith.addf %47, %52 : vector<256x8xf32>
    %cst_44 = arith.constant 0.000000e+00 : f32
    %54 = vector.broadcast %cst_44 : f32 to vector<256x8xf32>
    %55 = arith.maximumf %53, %54 : vector<256x8xf32>
    %56 = vector.shape_cast %55 : vector<256x8xf32> to vector<1x16x16x8xf32>
    %c0_45 = arith.constant 0 : index
    %c0_46 = arith.constant 0 : index
    %c0_47 = arith.constant 0 : index
    %c0_48 = arith.constant 0 : index
    %57 = vector.load %arg4[%c0_45, %c0_46, %c0_47, %c0_48] : memref<1x16x16x8xf32, #tpu.memory_space<vmem>>, vector<1x16x16x8xf32>
    tpu.vector_store %arg4[%c0_45, %c0_46, %c0_47, %c0_48], %56 {strides = array<i32>} : memref<1x16x16x8xf32, #tpu.memory_space<vmem>>, vector<1x16x16x8xf32>,
    return
  }
  func.func @transform_0(%arg0: i32, %arg1: i32) -> (i32, i32, i32, i32) {
    %c0_i32 = arith.constant 0 : i32
    %c0_i32_0 = arith.constant 0 : i32
    %c0_i32_1 = arith.constant 0 : i32
    %c0_i32_2 = arith.constant 0 : i32
    return %arg0, %c0_i32, %c0_i32_0, %c0_i32_1 : i32, i32, i32, i32
  }
  func.func @transform_1(%arg0: i32, %arg1: i32) -> (i32, i32, i32) {
    %c0_i32 = arith.constant 0 : i32
    %c0_i32_0 = arith.constant 0 : i32
    %c0_i32_1 = arith.constant 0 : i32
    %c0_i32_2 = arith.constant 0 : i32
    return %c0_i32, %c0_i32_0, %c0_i32_1 : i32, i32, i32
  }
  func.func @transform_2(%arg0: i32, %arg1: i32) -> (i32, i32, i32, i32) {
    %c0_i32 = arith.constant 0 : i32
    %c0_i32_0 = arith.constant 0 : i32
    %c0_i32_1 = arith.constant 0 : i32
    return %arg0, %arg1, %c0_i32, %c0_i32_0 : i32, i32, i32, i32
  }
}

</mosaic_0001>

<bundles_post_ra>
// kernel: tpu_custom_call.1
= control target key start
LH: loop header
LB: loop body
LE: loop exit
PB: predicated region body
PF: predicated region fallthrough
CT: control target
= control target key end

     0   :  { %s6308_s9 = smov 0   ;;  %s6310_s10 = smov 0   ;;  %s8108_s0 = inlined_call_operand.vmem [shape: bf16[2,18,18,4], index: 0, kind: input, shape index: {}]   ;;  %s8109_s1 = inlined_call_operand.vmem [shape: bf16[9,4,8], index: 1, kind: input, shape index: {}]   ;;  %s8110_s2 = inlined_call_operand.vmem [shape: f32[2,16,16,8], index: 2, kind: output, shape index: {}]  }
   0x1   :  { %s6312_s11 = smov 0  }
   0x2 LB: > { %s24_s12 = sadd.s32 1, %s6287_s10  ;;  %p4877_p0 = scmp.ge.s32.totalorder %s6291_s11, 1  ;;  %s6291_s11 = sphi %s6312_s11, %s12_s11   ;;  %s6287_s10 = sphi %s6310_s10, %s8179_s10   ;;  %s6283_s9 = sphi %s6308_s9, %s8178_s9  }
   0x3   : > { %p26_p1 = scmp.ge.s32.totalorder %s24_s12, 2  ;;  %p126_p2 = scmp.lt.s32.totalorder %s6291_s11, 3 }
   0x5   : > { %s8181_s12 = smov (%p26_p1, %s24_s12), 0  ;;  %p127_p3 = pnand %p4877_p0, %p126_p2 }
   0x7   : > { %130 = sbr.rel (%p127_p3) target bundleno = 586 (0x24a), region = 28 }
   0xe   : > { %v171_v0 = vld [vmem:[%s8109_s1 + $0x2] sm:$0x3]  ;;  %vm711_vm0 = vcmask 1041408   ;;  %v174_v1 = vld [vmem:[%s8109_s1 + $0x8] sm:$0x3]  ;;  %p153_p4 = scmp.lt.s32.totalorder %s6283_s9, 1 }
   0xf   : > { %6129 = vmatprep.subr.msk.bf16.mxu1 %vm711_vm0, %v171_v0  ;;  %6133 = vmatprep.subr.msk.bf16.mxu0 %vm711_vm0, %v174_v1  ;;  %v713_v2 = vsel %vm711_vm0, %v171_v0, 0  ;;  %v6336_v3 = vsel %vm711_vm0, %v174_v1, 0  ;;  %v170_v4 = vld [vmem:[%s8109_s1] sm:$0x3]  ;;  %v175_v5 = vld [vmem:[%s8109_s1 + $0xa] sm:$0x3] }
  0x10   : > { %8124 = vst [vmem:[#allocation2_spill] sm:$0xff] %v6336_v3  ;;  %5566 = vmatpush3.bf16.msra.mxu1 %v713_v2  ;;  %5702 = vmatpush3.bf16.msra.mxu0 %v6336_v3  ;;  %s8183_s9 = smov (!%p153_p4, %s6283_s9), 1  ;;  %vm227_vm1 = vsmask.f32 3328  ;;  %vm228_vm2 = vsmask.f32 7440 }
  0x11   : > { %6130 = vmatprep.subr.msk.bf16.mxu1 %vm711_vm0, %v170_v4  ;;  %6135 = vmatprep.subr.msk.bf16.mxu0 %vm711_vm0, %v175_v5  ;;  %s6139_s21 = smul.u32 216, %s8183_s9  ;;  %vm662_vm3 = vcmask 31744   ;;  %v6366_v17 = vsel %vm711_vm0, %v170_v4, 0  ;;  %v6372_v26 = vld [vmem:[%s8109_s1 + $0xc] sm:$0x3]  ;;  %vm6379_vm4 = vmor %vm227_vm1, %vm228_vm2  ;;  %v6385_v37 = vsel %vm711_vm0, %v175_v5, 0 }
  0x12   : > { %v6389_v41 = vsel %vm711_vm0, %v6372_v26, 0  ;;  %vm1216_vm5 = vcmask 1042432   ;;  %vm1217_vm6 = vcmask 1046532   ;;  %s5411_s15 = sshll.u32 %s8183_s9, 8  ;;  %vm4753_vm8 = vcmask 64512  }
  0x13   : > { %s6353_s24 = scalar_lea.vmem %s8108_s0, %s6139_s21  ;;  %vm6605_vm7 = vmor %vm1216_vm5, %vm1217_vm6  ;;  %s8033_s18 = scalar_lea.vmem %s8110_s2, %s5411_s15 }
  0x14   : > { %v179_v6 = vld [vmem:[%s6353_s24] sm:$0xf]  ;;  %v180_v7 = vld [vmem:[%s6353_s24 + $0x4] sm:$0xf]  ;;  %v211_v8 = vld [vmem:[%s6353_s24 + $0x8] sm:$0x1] }
  0x15   : > { %v231_v9 = vshrl.u32 %v179_v6, 16  ;;  %v234_v10 = vshll.u32 %v179_v6, 16  ;;  %v240_v11 = vshll.u32 %v180_v7, 16  ;;  %v244_v12 = vshrl.u32 %v180_v7, 16  ;;  %v5057_v13 = vld [vmem:[%s6353_s24 + $0xc] sm:$0xf] }
  0x16   : > { %v250_v14 = vshll.u32 %v211_v8, 16  ;;  %v6360_v15 = vld [vmem:[%s6353_s24 + $0x10] sm:$0xf]  ;;  %v6363_v16 = vld [vmem:[%s6353_s24 + $0x14] sm:$0x1]  ;;  %v2029_v23 = vshrl.u32 %v5057_v13, 16 }
  0x17   : > { %v233_v18 = vrot.slane %v231_v9, 4  ;;  %v236_v19 = vrot.slane %v234_v10, 5  ;;  %v242_v20 = vrot.slane %v240_v11, 5  ;;  %v246_v21 = vrot.slane %v244_v12, 4  ;;  %v181_v31 = vld [vmem:[%s6353_s24 + $0xc] sm:$0xf] }
  0x18   : > { %v252_v22 = vrot.slane %v250_v14, 5  ;;  %v2032_v24 = vshll.u32 %v5057_v13, 16  ;;  %v2038_v25 = vshll.u32 %v6360_v15, 16  ;;  %v2042_v29 = vshrl.u32 %v6360_v15, 16  ;;  %v182_v36 = vld [vmem:[%s6353_s24 + $0x10] sm:$0xf] }
  0x19   : > { %v237_v27 = vor.u32 %v236_v19, %v233_v18  ;;  %v247_v28 = vor.u32 %v246_v21, %v242_v20  ;;  %v2048_v30 = vshll.u32 %v6363_v16, 16  ;;  %v2031_v33 = vrot.slane %v2029_v23, 4  ;;  %v212_v44 = vld [vmem:[%s6353_s24 + $0x14] sm:$0x1]  ;;  %v5060_v55 = vld [vmem:[%s6353_s24 + $0x18] sm:$0xf] }
  0x1a   : > { %v2034_v34 = vrot.slane %v2032_v24, 5  ;;  %v2040_v35 = vrot.slane %v2038_v25, 5  ;;  %v2044_v40 = vrot.slane %v2042_v29, 4  ;;  %v255_v45 = vshrl.u32 %v181_v31, 16  ;;  %v6398_v60 = vld [vmem:[%s6353_s24 + $0x1c] sm:$0xf] }
  0x1b   : > { %v238_v38 = vrot.slane %v237_v27, 4  ;;  %v248_v39 = vrot.slane %v247_v28, 4  ;;  %v2050_v43 = vrot.slane %v2048_v30, 5  ;;  %v258_v46 = vshll.u32 %v181_v31, 16  ;;  %v6406_v1 = vld [vmem:[%s6353_s24 + $0x20] sm:$0x1] }
  0x1c   : > { %v2035_v42 = vor.u32 %v2034_v34, %v2031_v33  ;;  %v2045_v49 = vor.u32 %v2044_v40, %v2040_v35  ;;  %v264_v50 = vshll.u32 %v182_v36, 16  ;;  %v257_v53 = vrot.slane %v255_v45, 4  ;;  %v183_v18 = vld [vmem:[%s6353_s24 + $0x18] sm:$0xf]  ;;  %v184_v23 = vld [vmem:[%s6353_s24 + $0x1c] sm:$0xf] }
  0x1d   : > { %v243_v47 = vsel %vm6379_vm4, %v238_v38, %v242_v20  ;;  %v253_v48 = vsel %vm6379_vm4, %v248_v39, %v252_v22  ;;  %v260_v54 = vrot.slane %v258_v46, 5  ;;  %v268_v58 = vshrl.u32 %v182_v36, 16  ;;  %v213_v31 = vld [vmem:[%s6353_s24 + $0x20] sm:$0x1]  ;;  %v5063_v40 = vld [vmem:[%s6353_s24 + $0x24] sm:$0xf] }
  0x1e   : > { %v4881_v51 = vcombine.low %v243_v47, %v253_v48  ;;  %v2036_v52 = vrot.slane %v2035_v42, 4  ;;  %v2046_v56 = vrot.slane %v2045_v49, 4  ;;  %v266_v57 = vrot.slane %v264_v50, 5  ;;  %v6429_v46 = vld [vmem:[%s6353_s24 + $0x28] sm:$0xf] }
  0x1f   : > { %v274_v59 = vshll.u32 %v212_v44, 16  ;;  %v2770_v62 = vrot.slane %v6360_v15, 5  ;;  %v2773_v63 = vrot.slane %v6363_v16, 5  ;;  %v261_v0 = vor.u32 %v260_v54, %v257_v53  ;;  %v6438_v54 = vld [vmem:[%s6353_s24 + $0x2c] sm:$0x1] }
  0x20   : > { %5567 = vmatprep.mubr.msk.bf16.mxu1 %vm662_vm3, %v4881_v51  ;;  %v2041_v61 = vsel %vm6379_vm4, %v2036_v52, %v2040_v35  ;;  %v2051_v2 = vsel %vm6379_vm4, %v2046_v56, %v2050_v43  ;;  %v270_v4 = vrot.slane %v268_v58, 4  ;;  %v2053_v6 = vshrl.u32 %v5060_v55, 16  ;;  %v172_v51 = vld [vmem:[%s8109_s1 + $0x4] sm:$0x3]  ;;  %v6638_v16 = vld [vmem:[%s6353_s24 + $0x7c] sm:$0xf] }
  0x21   : > { %v276_v5 = vrot.slane %v274_v59, 5  ;;  %v5105_v7 = vcombine.low %v2041_v61, %v2051_v2  ;;  %v262_v8 = vrot.slane %v261_v0, 4  ;;  %v2056_v9 = vshll.u32 %v5060_v55, 16  ;;  %v185_v0 = vld [vmem:[%s6353_s24 + $0x24] sm:$0xf] }
  0x22   : > { %v2062_v10 = vshll.u32 %v6398_v60, 16  ;;  %v271_v11 = vor.u32 %v270_v4, %v266_v57  ;;  %v2055_v12 = vrot.slane %v2053_v6, 4  ;;  %v2066_v13 = vshrl.u32 %v6398_v60, 16 }
  0x23   : > { %v2072_v14 = vshll.u32 %v6406_v1, 16  ;;  %5703 = vmatprep.mubr.msk.bf16.mxu0 %vm662_vm3, %v5105_v7  ;;  %v267_v19 = vsel %vm6379_vm4, %v262_v8, %v266_v57  ;;  %v2058_v20 = vrot.slane %v2056_v9, 5  ;;  %v2777_v22 = vrot.slane %v6398_v60, 5  ;;  %v186_v7 = vld [vmem:[%s6353_s24 + $0x28] sm:$0xf] }
  0x24   : > { %v2064_v21 = vrot.slane %v2062_v10, 5  ;;  %v272_v24 = vrot.slane %v271_v11, 4  ;;  %v2068_v25 = vrot.slane %v2066_v13, 4  ;;  %v2780_v28 = vrot.slane %v6406_v1, 5  ;;  %v214_v13 = vld [vmem:[%s6353_s24 + $0x2c] sm:$0x1] }
  0x25   : > { %v2074_v27 = vrot.slane %v2072_v14, 5  ;;  %v2059_v29 = vor.u32 %v2058_v20, %v2055_v12  ;;  %v6422_v30 = vrot.slane %v2777_v22, 4  ;;  %v279_v33 = vshrl.u32 %v183_v18, 16 }
  0x26   : > { %v282_v34 = vshll.u32 %v183_v18, 16  ;;  %v277_v35 = vsel %vm6379_vm4, %v272_v24, %v276_v5  ;;  %v2069_v36 = vor.u32 %v2068_v25, %v2064_v21  ;;  %v288_v38 = vshll.u32 %v184_v23, 16  ;;  %v5066_v24 = vld [vmem:[%s6353_s24 + $0x30] sm:$0xf] }
  0x27   : > { %v292_v39 = vshrl.u32 %v184_v23, 16  ;;  %v4882_v42 = vcombine.low %v267_v19, %v277_v35  ;;  %v2060_v43 = vrot.slane %v2059_v29, 4  ;;  %v281_v44 = vrot.slane %v279_v33, 4  ;;  %v6458_v33 = vld [vmem:[%s6353_s24 + $0x34] sm:$0xf] }
  0x28   : > { %v284_v45 = vrot.slane %v282_v34, 5  ;;  %v2070_v47 = vrot.slane %v2069_v36, 4  ;;  %v290_v48 = vrot.slane %v288_v38, 5  ;;  %v298_v50 = vshll.u32 %v213_v31, 16 }
  0x29   : > { %v294_v49 = vrot.slane %v292_v39, 4  ;;  %5568 = vmatmul.mubr.msk.bf16.vlgmr.msra.gmra.mrb[0].mxu1 %vm662_vm3, %v4882_v42  ;;  %v2065_v52 = vsel %vm6379_vm4, %v2060_v43, %v2064_v21  ;;  %v2077_v55 = vshrl.u32 %v5063_v40, 16  ;;  %v2080_v56 = vshll.u32 %v5063_v40, 16  ;;  %v6466_v40 = vld [vmem:[%s6353_s24 + $0x38] sm:$0x1] }
  0x2a   : > { %v285_v53 = vor.u32 %v284_v45, %v281_v44  ;;  %5600 = vmatpush3.bf16.msra.mxu1 %v6366_v17  ;;  %v2075_v57 = vsel %vm6379_vm4, %v2070_v47, %v2074_v27  ;;  %v300_v59 = vrot.slane %v298_v50, 5  ;;  %v2086_v61 = vshll.u32 %v6429_v46, 16 }
  0x2b   : > { %v295_v58 = vor.u32 %v294_v49, %v290_v48  ;;  %v5106_v2 = vcombine.low %v2065_v52, %v2075_v57  ;;  %v2079_v5 = vrot.slane %v2077_v55, 4  ;;  %v2082_v6 = vrot.slane %v2080_v56, 5  ;;  %6131 = vmatprep.subr.msk.bf16.mxu1 %vm711_vm0, %v172_v51  ;;  %v187_v52 = vld [vmem:[%s6353_s24 + $0x30] sm:$0xf] }
  0x2c   : > { %v286_v4 = vrot.slane %v285_v53, 4  ;;  %v2088_v9 = vrot.slane %v2086_v61, 5  ;;  %v2090_v17 = vshrl.u32 %v6429_v46, 16  ;;  %v2096_v10 = vshll.u32 %v6438_v54, 16 }
  0x2d   : > { %v296_v8 = vrot.slane %v295_v58, 4  ;;  %5704 = vmatmul.mubr.msk.bf16.vlgmr.msra.gmra.mrb[0].mxu0 %vm662_vm3, %v5106_v2  ;;  %v2083_v12 = vor.u32 %v2082_v6, %v2079_v5  ;;  %v303_v14 = vshrl.u32 %v185_v0, 16  ;;  %v306_v18 = vshll.u32 %v185_v0, 16  ;;  %v188_v58 = vld [vmem:[%s6353_s24 + $0x34] sm:$0xf] }
  0x2e   : > { %v291_v11 = vsel %vm6379_vm4, %v286_v4, %v290_v48  ;;  %5736 = vmatpush3.bf16.msra.mxu0 %v6385_v37  ;;  %v2092_v20 = vrot.slane %v2090_v17, 4  ;;  %v2098_v21 = vrot.slane %v2096_v10, 5  ;;  %v312_v23 = vshll.u32 %v186_v7, 16  ;;  %v215_v4 = vld [vmem:[%s6353_s24 + $0x38] sm:$0x1] }
  0x2f   : > { %v301_v19 = vsel %vm6379_vm4, %v296_v8, %v300_v59  ;;  %v2084_v27 = vrot.slane %v2083_v12, 4  ;;  %v305_v29 = vrot.slane %v303_v14, 4  ;;  %v308_v31 = vrot.slane %v306_v18, 5  ;;  %6136 = vmatprep.subr.msk.bf16.mxu0 %vm711_vm0, %v6372_v26  ;;  %v5069_v12 = vld [vmem:[%s6353_s24 + $0x3c] sm:$0xf] }
  0x30   : > { %v4883_v25 = vcombine.low %v291_v11, %v301_v19  ;;  %v2093_v34 = vor.u32 %v2092_v20, %v2088_v9  ;;  %v314_v35 = vrot.slane %v312_v23, 5  ;;  %v316_v37 = vshrl.u32 %v186_v7, 16  ;;  %v6483_v20 = vld [vmem:[%s6353_s24 + $0x40] sm:$0xf] }
  0x31   : > { %v322_v36 = vshll.u32 %v214_v13, 16  ;;  %v2089_v38 = vsel %vm6379_vm4, %v2084_v27, %v2088_v9  ;;  %v309_v39 = vor.u32 %v308_v31, %v305_v29  ;;  %v2101_v42 = vshrl.u32 %v5066_v24, 16 }
  0x32   : > { %5571 = vmatprep.mubr.msk.bf16.mxu1 %vm662_vm3, %v4883_v25  ;;  %v2104_v43 = vshll.u32 %v5066_v24, 16  ;;  %v2094_v44 = vrot.slane %v2093_v34, 4  ;;  %v318_v45 = vrot.slane %v316_v37, 4  ;;  %v2110_v26 = vshll.u32 %v6458_v33, 16  ;;  %v6488_v34 = vld [vmem:[%s6353_s24 + $0x44] sm:$0x1] }
  0x33   : > { %v324_v47 = vrot.slane %v322_v36, 5  ;;  %v310_v48 = vrot.slane %v309_v39, 4  ;;  %v2103_v49 = vrot.slane %v2101_v42, 4  ;;  %v2114_v51 = vshrl.u32 %v6458_v33, 16  ;;  %v189_v42 = vld [vmem:[%s6353_s24 + $0x3c] sm:$0xf] }
  0x34   : > { %v2106_v50 = vrot.slane %v2104_v43, 5  ;;  %v2099_v53 = vsel %vm6379_vm4, %v2094_v44, %v2098_v21  ;;  %v319_v55 = vor.u32 %v318_v45, %v314_v35  ;;  %v2112_v56 = vrot.slane %v2110_v26, 5  ;;  %v190_v26 = vld [vmem:[%s6353_s24 + $0x40] sm:$0xf] }
  0x35   : > { %v2120_v57 = vshll.u32 %v6466_v40, 16  ;;  %v5107_v59 = vcombine.low %v2089_v38, %v2099_v53  ;;  %v315_v61 = vsel %vm6379_vm4, %v310_v48, %v314_v35  ;;  %v2116_v2 = vrot.slane %v2114_v51, 4 }
  0x36   : > { %v2107_v0 = vor.u32 %v2106_v50, %v2103_v49  ;;  %v320_v5 = vrot.slane %v319_v55, 4  ;;  %v327_v7 = vshrl.u32 %v187_v52, 16  ;;  %v330_v8 = vshll.u32 %v187_v52, 16 }
  0x37   : > { %v2122_v6 = vrot.slane %v2120_v57, 5  ;;  %5707 = vmatprep.mubr.msk.bf16.mxu0 %vm662_vm3, %v5107_v59  ;;  %v2117_v17 = vor.u32 %v2116_v2, %v2112_v56  ;;  %v336_v10 = vshll.u32 %v188_v58, 16  ;;  %v340_v11 = vshrl.u32 %v188_v58, 16  ;;  %v5072_v2 = vld [vmem:[%s6353_s24 + $0x48] sm:$0xf] }
  0x38   : > { %v2108_v9 = vrot.slane %v2107_v0, 4  ;;  %v325_v13 = vsel %vm6379_vm4, %v320_v5, %v324_v47  ;;  %v329_v14 = vrot.slane %v327_v7, 4  ;;  %v332_v18 = vrot.slane %v330_v8, 5  ;;  %v6506_v8 = vld [vmem:[%s6353_s24 + $0x4c] sm:$0xf] }
  0x39   : > { %v346_v19 = vshll.u32 %v215_v4, 16  ;;  %v4884_v21 = vcombine.low %v315_v61, %v325_v13  ;;  %v2118_v24 = vrot.slane %v2117_v17, 4  ;;  %v338_v25 = vrot.slane %v336_v10, 5  ;;  %v216_v61 = vld [vmem:[%s6353_s24 + $0x44] sm:$0x1] }
  0x3a   : > { %v2113_v23 = vsel %vm6379_vm4, %v2108_v9, %v2112_v56  ;;  %v333_v27 = vor.u32 %v332_v18, %v329_v14  ;;  %v342_v29 = vrot.slane %v340_v11, 4  ;;  %v2125_v35 = vshrl.u32 %v5069_v12, 16 }
  0x3b   : > { %v348_v31 = vrot.slane %v346_v19, 5  ;;  %5572 = vmatmul.mubr.msk.bf16.gmra.mrb[4].mxu1 %vm662_vm3, %v4884_v21  ;;  %v2123_v37 = vsel %vm6379_vm4, %v2118_v24, %v2122_v6  ;;  %v2128_v36 = vshll.u32 %v5069_v12, 16  ;;  %v2134_v38 = vshll.u32 %v6483_v20, 16 }
  0x3c   : > { %v2138_v39 = vshrl.u32 %v6483_v20, 16  ;;  %v5108_v43 = vcombine.low %v2113_v23, %v2123_v37  ;;  %v334_v44 = vrot.slane %v333_v27, 4  ;;  %v343_v45 = vor.u32 %v342_v29, %v338_v25  ;;  %v6514_v23 = vld [vmem:[%s6353_s24 + $0x50] sm:$0x1]  ;;  %v6518_v27 = vld [vmem:[%s6353_s24 + $0x48] sm:$0xf] }
  0x3d   : > { %v2127_v47 = vrot.slane %v2125_v35, 4  ;;  %v2130_v48 = vrot.slane %v2128_v36, 5  ;;  %v2136_v49 = vrot.slane %v2134_v38, 5  ;;  %v2144_v51 = vshll.u32 %v6488_v34, 16  ;;  %v6521_v36 = vld [vmem:[%s6353_s24 + $0x4c] sm:$0xf] }
  0x3e   : > { %v2140_v50 = vrot.slane %v2138_v39, 4  ;;  %5708 = vmatmul.mubr.msk.bf16.gmra.mrb[4].mxu0 %vm662_vm3, %v5108_v43  ;;  %v339_v52 = vsel %vm6379_vm4, %v334_v44, %v338_v25  ;;  %v344_v53 = vrot.slane %v343_v45, 4  ;;  %v351_v55 = vshrl.u32 %v189_v42, 16 }
  0x3f   : > { %v354_v56 = vshll.u32 %v189_v42, 16  ;;  %v2131_v57 = vor.u32 %v2130_v48, %v2127_v47  ;;  %v2146_v59 = vrot.slane %v2144_v51, 5  ;;  %v360_v0 = vshll.u32 %v190_v26, 16 }
  0x40   : > { %v2141_v58 = vor.u32 %v2140_v50, %v2136_v49  ;;  %v349_v4 = vsel %vm6379_vm4, %v344_v53, %v348_v31  ;;  %v353_v5 = vrot.slane %v351_v55, 4  ;;  %v364_v7 = vshrl.u32 %v190_v26, 16  ;;  %v217_v26 = vld [vmem:[%s6353_s24 + $0x50] sm:$0x1]  ;;  %v5075_v53 = vld [vmem:[%s6353_s24 + $0x54] sm:$0xf] }
  0x41   : > { %v356_v6 = vrot.slane %v354_v56, 5  ;;  %v4885_v9 = vcombine.low %v339_v52, %v349_v4  ;;  %v2132_v17 = vrot.slane %v2131_v57, 4  ;;  %v362_v11 = vrot.slane %v360_v0, 5  ;;  %v6537_v4 = vld [vmem:[%s6353_s24 + $0x58] sm:$0xf] }
  0x42   : > { %v2142_v10 = vrot.slane %v2141_v58, 4  ;;  %v366_v13 = vrot.slane %v364_v7, 4  ;;  %v370_v14 = vshll.u32 %v216_v61, 16  ;;  %v2149_v18 = vshrl.u32 %v5072_v2, 16 }
  0x43   : > { %v357_v12 = vor.u32 %v356_v6, %v353_v5  ;;  %5575 = vmatprep.mubr.msk.bf16.mxu1 %vm662_vm3, %v4885_v9  ;;  %v2137_v19 = vsel %vm6379_vm4, %v2132_v17, %v2136_v49  ;;  %v2152_v24 = vshll.u32 %v5072_v2, 16  ;;  %v2158_v25 = vshll.u32 %v6506_v8, 16 }
  0x44   : > { %v2147_v21 = vsel %vm6379_vm4, %v2142_v10, %v2146_v59  ;;  %v367_v35 = vor.u32 %v366_v13, %v362_v11  ;;  %v372_v37 = vrot.slane %v370_v14, 5  ;;  %v2151_v38 = vrot.slane %v2149_v18, 4 }
  0x45   : > { %v5109_v29 = vcombine.low %v2137_v19, %v2147_v21  ;;  %v358_v31 = vrot.slane %v357_v12, 4  ;;  %v2154_v39 = vrot.slane %v2152_v24, 5  ;;  %v2160_v42 = vrot.slane %v2158_v25, 5  ;;  %v6543_v12 = vld [vmem:[%s6353_s24 + $0x5c] sm:$0x1] }
  0x46   : > { %v2162_v43 = vshrl.u32 %v6506_v8, 16  ;;  %v368_v45 = vrot.slane %v367_v35, 4  ;;  %v2168_v47 = vshll.u32 %v6514_v23, 16  ;;  %v375_v48 = vshrl.u32 %v6518_v27, 16  ;;  %v6547_v24 = vld [vmem:[%s6353_s24 + $0x54] sm:$0xf] }
  0x47   : > { %5711 = vmatprep.mubr.msk.bf16.mxu0 %vm662_vm3, %v5109_v29  ;;  %v363_v44 = vsel %vm6379_vm4, %v358_v31, %v362_v11  ;;  %v2155_v49 = vor.u32 %v2154_v39, %v2151_v38  ;;  %v378_v51 = vshll.u32 %v6518_v27, 16  ;;  %v384_v52 = vshll.u32 %v6521_v36, 16 }
  0x48   : > { %v2164_v50 = vrot.slane %v2162_v43, 4  ;;  %v373_v55 = vsel %vm6379_vm4, %v368_v45, %v372_v37  ;;  %v2170_v56 = vrot.slane %v2168_v47, 5  ;;  %v377_v57 = vrot.slane %v375_v48, 4  ;;  %v6553_v37 = vld [vmem:[%s6353_s24 + $0x58] sm:$0xf] }
  0x49   : > { %v388_v58 = vshrl.u32 %v6521_v36, 16  ;;  %v4886_v59 = vcombine.low %v363_v44, %v373_v55  ;;  %v2156_v61 = vrot.slane %v2155_v49, 4  ;;  %v380_v2 = vrot.slane %v378_v51, 5 }
  0x4a   : > { %v2165_v0 = vor.u32 %v2164_v50, %v2160_v42  ;;  %v386_v5 = vrot.slane %v384_v52, 5  ;;  %v394_v7 = vshll.u32 %v217_v26, 16  ;;  %v2173_v9 = vshrl.u32 %v5075_v53, 16  ;;  %v218_v26 = vld [vmem:[%s6353_s24 + $0x5c] sm:$0x1] }
  0x4b   : > { %v390_v6 = vrot.slane %v388_v58, 4  ;;  %5576 = vmatmul.mubr.msk.bf16.gmra.mrb[8].mxu1 %vm662_vm3, %v4886_v59  ;;  %v2161_v17 = vsel %vm6379_vm4, %v2156_v61, %v2160_v42  ;;  %v381_v11 = vor.u32 %v380_v2, %v377_v57  ;;  %v2176_v13 = vshll.u32 %v5075_v53, 16  ;;  %v5078_v53 = vld [vmem:[%s6353_s24 + $0x60] sm:$0xf]  ;;  %v6567_v59 = vld [vmem:[%s6353_s24 + $0x64] sm:$0xf] }
  0x4c   : > { %v2166_v10 = vrot.slane %v2165_v0, 4  ;;  %v396_v18 = vrot.slane %v394_v7, 5  ;;  %v2175_v19 = vrot.slane %v2173_v9, 4  ;;  %v2182_v21 = vshll.u32 %v6537_v4, 16  ;;  %v6574_v9 = vld [vmem:[%s6353_s24 + $0x68] sm:$0x1] }
  0x4d   : > { %v391_v14 = vor.u32 %v390_v6, %v386_v5  ;;  %v382_v29 = vrot.slane %v381_v11, 4  ;;  %v2178_v31 = vrot.slane %v2176_v13, 5  ;;  %v2186_v35 = vshrl.u32 %v6537_v4, 16 }
  0x4e   : > { %v2171_v25 = vsel %vm6379_vm4, %v2166_v10, %v2170_v56  ;;  %v2184_v42 = vrot.slane %v2182_v21, 5  ;;  %v2192_v43 = vshll.u32 %v6543_v12, 16  ;;  %v399_v48 = vshrl.u32 %v6547_v24, 16 }
  0x4f   : > { %v5110_v38 = vcombine.low %v2161_v17, %v2171_v25  ;;  %v392_v39 = vrot.slane %v391_v14, 4  ;;  %v387_v44 = vsel %vm6379_vm4, %v382_v29, %v386_v5  ;;  %v2179_v45 = vor.u32 %v2178_v31, %v2175_v19  ;;  %v6578_v19 = vld [vmem:[%s6353_s24 + $0x60] sm:$0xf] }
  0x50   : > { %v2188_v47 = vrot.slane %v2186_v35, 4  ;;  %v2194_v50 = vrot.slane %v2192_v43, 5  ;;  %v402_v51 = vshll.u32 %v6547_v24, 16  ;;  %v408_v52 = vshll.u32 %v6553_v37, 16  ;;  %v6584_v35 = vld [vmem:[%s6353_s24 + $0x64] sm:$0xf] }
  0x51   : > { %5712 = vmatmul.mubr.msk.bf16.gmra.mrb[8].mxu0 %vm662_vm3, %v5110_v38  ;;  %v397_v49 = vsel %vm6379_vm4, %v392_v39, %v396_v18  ;;  %v2180_v56 = vrot.slane %v2179_v45, 4  ;;  %v401_v58 = vrot.slane %v399_v48, 4  ;;  %v412_v2 = vshrl.u32 %v6553_v37, 16 }
  0x52   : > { %v4887_v55 = vcombine.low %v387_v44, %v397_v49  ;;  %v2189_v57 = vor.u32 %v2188_v47, %v2184_v42  ;;  %v404_v61 = vrot.slane %v402_v51, 5  ;;  %v410_v0 = vrot.slane %v408_v52, 5 }
  0x53   : > { %v418_v5 = vshll.u32 %v218_v26, 16  ;;  %v2185_v6 = vsel %vm6379_vm4, %v2180_v56, %v2184_v42  ;;  %v2197_v17 = vshrl.u32 %v5078_v53, 16  ;;  %v2200_v10 = vshll.u32 %v5078_v53, 16 }
  0x54   : > { %5579 = vmatprep.mubr.msk.bf16.mxu1 %vm662_vm3, %v4887_v55  ;;  %v2190_v7 = vrot.slane %v2189_v57, 4  ;;  %v405_v11 = vor.u32 %v404_v61, %v401_v58  ;;  %v414_v13 = vrot.slane %v412_v2, 4  ;;  %v2206_v18 = vshll.u32 %v6567_v59, 16  ;;  %v5137_v58 = vld [vmem:[%s6353_s24 + $0xc] sm:$0xe] }
  0x55   : > { %v420_v14 = vrot.slane %v418_v5, 5  ;;  %v2199_v25 = vrot.slane %v2197_v17, 4  ;;  %v2202_v29 = vrot.slane %v2200_v10, 5  ;;  %v2210_v31 = vshrl.u32 %v6567_v59, 16 }
  0x56   : > { %v2195_v21 = vsel %vm6379_vm4, %v2190_v7, %v2194_v50  ;;  %v406_v39 = vrot.slane %v405_v11, 4  ;;  %v415_v42 = vor.u32 %v414_v13, %v410_v0  ;;  %v2208_v43 = vrot.slane %v2206_v18, 5  ;;  %v219_v50 = vld [vmem:[%s6353_s24 + $0x68] sm:$0x1] }
  0x57   : > { %v5111_v38 = vcombine.low %v2185_v6, %v2195_v21  ;;  %v2203_v44 = vor.u32 %v2202_v29, %v2199_v25  ;;  %v2212_v45 = vrot.slane %v2210_v31, 4  ;;  %v2216_v47 = vshll.u32 %v6574_v9, 16  ;;  %v6612_v29 = vld [vmem:[%s6353_s24 + $0x70] sm:$0xf] }
  0x58   : > { %v423_v26 = vshrl.u32 %v6578_v19, 16  ;;  %v411_v48 = vsel %vm6379_vm4, %v406_v39, %v410_v0  ;;  %v416_v49 = vrot.slane %v415_v42, 4  ;;  %v426_v51 = vshll.u32 %v6578_v19, 16  ;;  %v6599_v0 = vld [vmem:[%s6353_s24 + $0x6c] sm:$0xf] }
  0x59   : > { %5715 = vmatprep.mubr.msk.bf16.mxu0 %vm662_vm3, %v5111_v38  ;;  %v432_v52 = vshll.u32 %v6584_v35, 16  ;;  %v2204_v53 = vrot.slane %v2203_v44, 4  ;;  %v2213_v55 = vor.u32 %v2212_v45, %v2208_v43  ;;  %v2218_v56 = vrot.slane %v2216_v47, 5 }
  0x5a   : > { %v425_v57 = vrot.slane %v423_v26, 4  ;;  %v421_v61 = vsel %vm6379_vm4, %v416_v49, %v420_v14  ;;  %v428_v2 = vrot.slane %v426_v51, 5  ;;  %v436_v6 = vshrl.u32 %v6584_v35, 16  ;;  %v220_v26 = vld [vmem:[%s6353_s24 + $0x74] sm:$0x1] }
  0x5b   : > { %v434_v5 = vrot.slane %v432_v52, 5  ;;  %v4888_v7 = vcombine.low %v411_v48, %v421_v61  ;;  %v2209_v17 = vsel %vm6379_vm4, %v2204_v53, %v2208_v43  ;;  %v2214_v10 = vrot.slane %v2213_v55, 4  ;;  %v5138_v48 = vld [vmem:[%s6353_s24 + $0x18] sm:$0xe] }
  0x5c   : > { %v442_v11 = vshll.u32 %v219_v50, 16  ;;  %v429_v14 = vor.u32 %v428_v2, %v425_v57  ;;  %v438_v18 = vrot.slane %v436_v6, 4  ;;  %v5153_v21 = vrot.slane %v5137_v58, 9  ;;  %v6631_v53 = vld [vmem:[%s6353_s24 + $0x78] sm:$0xf] }
  0x5d   : > { %v2772_v25 = vrot.slane %v2770_v62, 4  ;;  %5580 = vmatmul.mubr.msk.bf16.gmra.mrb[12].mxu1 %vm662_vm3, %v4888_v7  ;;  %v2219_v31 = vsel %vm6379_vm4, %v2214_v10, %v2218_v56  ;;  %v447_v39 = vshrl.u32 %v6599_v0, 16  ;;  %v450_v42 = vshll.u32 %v6599_v0, 16  ;;  %v221_v57 = vld [vmem:[%s6353_s24 + $0x80] sm:$0x1] }
  0x5e   : > { %v444_v38 = vrot.slane %v442_v11, 5  ;;  %v5112_v43 = vcombine.low %v2209_v17, %v2219_v31  ;;  %v430_v44 = vrot.slane %v429_v14, 4  ;;  %v439_v45 = vor.u32 %v438_v18, %v434_v5  ;;  %v5139_v10 = vld [vmem:[%s6353_s24 + $0x24] sm:$0xe] }
  0x5f   : > { %v2771_v47 = vsel %vm6605_vm7, %v5153_v21, %v2770_v62  ;;  %v2774_v49 = vsel %vm6605_vm7, %v2772_v25, %v2773_v63  ;;  %v449_v50 = vrot.slane %v447_v39, 4  ;;  %v452_v51 = vrot.slane %v450_v42, 5  ;;  %v6657_v39 = vld [vmem:[%s6353_s24 + $0x84] sm:$0xf] }
  0x60   : > { %v456_v52 = vshll.u32 %v6612_v29, 16  ;;  %5716 = vmatmul.mubr.msk.bf16.gmra.mrb[12].mxu0 %vm662_vm3, %v5112_v43  ;;  %v435_v15 = vsel %vm6379_vm4, %v430_v44, %v434_v5  ;;  %v440_v62 = vrot.slane %v439_v45, 4  ;;  %v5169_v55 = vcombine.low %v2771_v47, %v2774_v49  ;;  %v6665_v43 = vld [vmem:[%s6353_s24 + $0x88] sm:$0xf] }
  0x61   : > { %v460_v56 = vshrl.u32 %v6612_v29, 16  ;;  %v453_v63 = vor.u32 %v452_v51, %v449_v50  ;;  %v466_v61 = vshll.u32 %v220_v26, 16  ;;  %v5154_v2 = vrot.slane %v5138_v48, 9 }
  0x62   : > { %v458_v58 = vrot.slane %v456_v52, 5  ;;  %v445_v6 = vsel %vm6379_vm4, %v440_v62, %v444_v38  ;;  %5737 = vmatprep.mubr.msk.bf16.mxu0 %vm662_vm3, %v5169_v55  ;;  %v2781_v5 = vsel %vm6605_vm7, %v6422_v30, %v2780_v28  ;;  %v471_v17 = vshrl.u32 %v6631_v53, 16  ;;  %v222_v52 = vld [vmem:[%s6353_s24 + $0x8c] sm:$0x1] }
  0x63   : > { %v462_v7 = vrot.slane %v460_v56, 4  ;;  %v4889_v11 = vcombine.low %v435_v15, %v445_v6  ;;  %v454_v14 = vrot.slane %v453_v63, 4  ;;  %v468_v18 = vrot.slane %v466_v61, 5 }
  0x64   : > { %v2778_v21 = vsel %vm6605_vm7, %v5154_v2, %v2777_v22  ;;  %v473_v38 = vrot.slane %v471_v17, 4  ;;  %v474_v1 = vshll.u32 %v6631_v53, 16  ;;  %v480_v30 = vshll.u32 %v6638_v16, 16  ;;  %v6670_v22 = vld [vmem:[%s8109_s1 + $0xe] sm:$0x3] }
  0x65   : > { %v463_v25 = vor.u32 %v462_v7, %v458_v58  ;;  %v5170_v31 = vcombine.low %v2778_v21, %v2781_v5  ;;  %5583 = vmatprep.mubr.msk.bf16.mxu1 %vm662_vm3, %v4889_v11  ;;  %v459_v28 = vsel %vm6379_vm4, %v454_v14, %v458_v58  ;;  %v484_v60 = vshrl.u32 %v6638_v16, 16  ;;  %v6689_v5 = vld [vmem:[%s6353_s24 + $0x90] sm:$0xf] }
  0x66   : > { %v490_v42 = vshll.u32 %v221_v57, 16  ;;  %v476_v45 = vrot.slane %v474_v1, 5  ;;  %v5155_v47 = vrot.slane %v5139_v10, 9  ;;  %v2784_v26 = vrot.slane %v6429_v46, 5  ;;  %v5140_v57 = vld [vmem:[%s6353_s24 + $0x30] sm:$0xe] }
  0x67   : > { %v464_v44 = vrot.slane %v463_v25, 4  ;;  %v482_v48 = vrot.slane %v480_v30, 5  ;;  %v486_v49 = vrot.slane %v484_v60, 4  ;;  %v2787_v51 = vrot.slane %v6438_v54, 5  ;;  %v6701_v30 = vld [vmem:[%s6353_s24 + $0x94] sm:$0xf] }
  0x68   : > { %v492_v50 = vrot.slane %v490_v42, 5  ;;  %5738 = vmatmul.mubr.msk.bf16.vlgmr.msra.gmra.mrb[0].mxu0 %vm662_vm3, %v5170_v31  ;;  %v477_v62 = vor.u32 %v476_v45, %v473_v38  ;;  %v2785_v55 = vsel %vm6605_vm7, %v5155_v47, %v2784_v26  ;;  %v2786_v56 = vrot.slane %v2784_v26, 4  ;;  %v223_v60 = vld [vmem:[%s6353_s24 + $0x98] sm:$0x1]  ;;  %v5141_v26 = vld [vmem:[%s6353_s24 + $0x3c] sm:$0xe] }
  0x69   : > { %v469_v15 = vsel %vm6379_vm4, %v464_v44, %v468_v18  ;;  %5770 = vmatpush3.bf16.msra.mxu0 %v6389_v41  ;;  %v487_v46 = vor.u32 %v486_v49, %v482_v48  ;;  %v495_v58 = vshrl.u32 %v6657_v39, 16  ;;  %v498_v54 = vshll.u32 %v6657_v39, 16 }
  0x6a   : > { %v4890_v63 = vcombine.low %v459_v28, %v469_v15  ;;  %v478_v61 = vrot.slane %v477_v62, 4  ;;  %v2788_v2 = vsel %vm6605_vm7, %v2786_v56, %v2787_v51  ;;  %v504_v6 = vshll.u32 %v6665_v43, 16  ;;  %6137 = vmatprep.subr.msk.bf16.mxu0 %vm711_vm0, %v6670_v22 }
  0x6b   : > { %v508_v7 = vshrl.u32 %v6665_v43, 16  ;;  %v488_v41 = vrot.slane %v487_v46, 4  ;;  %v5171_v17 = vcombine.low %v2785_v55, %v2788_v2  ;;  %v497_v10 = vrot.slane %v495_v58, 4  ;;  %v6721_v46 = vld [vmem:[%s6353_s24 + $0xa0] sm:$0xf] }
  0x6c   : > { %5584 = vmatmul.mubr.msk.bf16.gmra.mrb[16].mxu1 %vm662_vm3, %v4890_v63  ;;  %v500_v11 = vrot.slane %v498_v54, 5  ;;  %v483_v14 = vsel %vm6379_vm4, %v478_v61, %v482_v48  ;;  %v506_v18 = vrot.slane %v504_v6, 5  ;;  %v514_v25 = vshll.u32 %v222_v52, 16  ;;  %v6710_v52 = vld [vmem:[%s6353_s24 + $0x9c] sm:$0xf] }
  0x6d   : > { %v510_v21 = vrot.slane %v508_v7, 4  ;;  %v493_v31 = vsel %vm6379_vm4, %v488_v41, %v492_v50  ;;  %5741 = vmatprep.mubr.msk.bf16.mxu0 %vm662_vm3, %v5171_v17  ;;  %v5156_v1 = vrot.slane %v5140_v57, 9  ;;  %v2791_v28 = vrot.slane %v6458_v33, 5 }
  0x6e   : > { %v501_v38 = vor.u32 %v500_v11, %v497_v10  ;;  %v4891_v42 = vcombine.low %v483_v14, %v493_v31  ;;  %v516_v45 = vrot.slane %v514_v25, 5  ;;  %v2794_v47 = vrot.slane %v6466_v40, 5  ;;  %v224_v10 = vld [vmem:[%s6353_s24 + $0xa4] sm:$0x1]  ;;  %v5142_v11 = vld [vmem:[%s6353_s24 + $0x48] sm:$0xe] }
  0x6f   : > { %v511_v44 = vor.u32 %v510_v21, %v506_v18  ;;  %v2792_v49 = vsel %vm6605_vm7, %v5156_v1, %v2791_v28  ;;  %v2793_v50 = vrot.slane %v2791_v28, 4  ;;  %v519_v51 = vshrl.u32 %v6689_v5, 16 }
  0x70   : > { %v502_v48 = vrot.slane %v501_v38, 4  ;;  %5587 = vmatprep.mubr.msk.bf16.mxu1 %vm662_vm3, %v4891_v42  ;;  %v522_v15 = vshll.u32 %v6689_v5, 16  ;;  %v528_v62 = vshll.u32 %v6701_v30, 16  ;;  %v532_v40 = vshrl.u32 %v6701_v30, 16 }
  0x71   : > { %v512_v33 = vrot.slane %v511_v44, 4  ;;  %v2795_v56 = vsel %vm6605_vm7, %v2793_v50, %v2794_v47  ;;  %v521_v57 = vrot.slane %v519_v51, 4  ;;  %v538_v63 = vshll.u32 %v223_v60, 16 }
  0x72   : > { %v507_v55 = vsel %vm6379_vm4, %v502_v48, %v506_v18  ;;  %v5172_v54 = vcombine.low %v2792_v49, %v2795_v56  ;;  %v524_v61 = vrot.slane %v522_v15, 5  ;;  %v530_v2 = vrot.slane %v528_v62, 5  ;;  %v6747_v56 = vld [vmem:[%s6353_s24 + $0xac] sm:$0xf] }
  0x73   : > { %v517_v58 = vsel %vm6379_vm4, %v512_v33, %v516_v45  ;;  %v534_v7 = vrot.slane %v532_v40, 4  ;;  %v540_v41 = vrot.slane %v538_v63, 5  ;;  %v5157_v17 = vrot.slane %v5141_v26, 9  ;;  %v6742_v33 = vld [vmem:[%s6353_s24 + $0xa8] sm:$0xf] }
  0x74   : > { %v4892_v6 = vcombine.low %v507_v55, %v517_v58  ;;  %5742 = vmatmul.mubr.msk.bf16.gmra.mrb[4].mxu0 %vm662_vm3, %v5172_v54  ;;  %v525_v14 = vor.u32 %v524_v61, %v521_v57  ;;  %v2798_v18 = vrot.slane %v6483_v20, 5  ;;  %v2801_v21 = vrot.slane %v6488_v34, 5  ;;  %v225_v61 = vld [vmem:[%s6353_s24 + $0xb0] sm:$0x1] }
  0x75   : > { %v543_v25 = vshrl.u32 %v6710_v52, 16  ;;  %v535_v31 = vor.u32 %v534_v7, %v530_v2  ;;  %v546_v38 = vshll.u32 %v6710_v52, 16  ;;  %v552_v1 = vshll.u32 %v6721_v46, 16 }
  0x76   : > { %5588 = vmatmul.mubr.msk.bf16.gmra.mrb[20].mxu1 %vm662_vm3, %v4892_v6  ;;  %v556_v28 = vshrl.u32 %v6721_v46, 16  ;;  %v526_v60 = vrot.slane %v525_v14, 4  ;;  %v2799_v42 = vsel %vm6605_vm7, %v5157_v17, %v2798_v18  ;;  %v2800_v20 = vrot.slane %v2798_v18, 4  ;;  %v6762_v14 = vld [vmem:[%s6353_s24 + $0xb4] sm:$0xf] }
  0x77   : > { %v545_v44 = vrot.slane %v543_v25, 4  ;;  %v536_v34 = vrot.slane %v535_v31, 4  ;;  %v548_v45 = vrot.slane %v546_v38, 5  ;;  %v554_v47 = vrot.slane %v552_v1, 5 }
  0x78   : > { %v558_v26 = vrot.slane %v556_v28, 4  ;;  %v531_v48 = vsel %vm6379_vm4, %v526_v60, %v530_v2  ;;  %v2802_v49 = vsel %vm6605_vm7, %v2800_v20, %v2801_v21  ;;  %v562_v50 = vshll.u32 %v224_v10, 16  ;;  %v5143_v2 = vld [vmem:[%s6353_s24 + $0x54] sm:$0xe] }
  0x79   : > { %v5158_v51 = vrot.slane %v5142_v11, 9  ;;  %v541_v15 = vsel %vm6379_vm4, %v536_v34, %v540_v41  ;;  %v5173_v62 = vcombine.low %v2799_v42, %v2802_v49  ;;  %v549_v40 = vor.u32 %v548_v45, %v545_v44  ;;  %v6771_v42 = vld [vmem:[%s6353_s24 + $0xb8] sm:$0xf]  ;;  %v226_v49 = vld [vmem:[%s6353_s24 + $0xbc] sm:$0x1] }
  0x7a   : > { %v559_v55 = vor.u32 %v558_v26, %v554_v47  ;;  %v4893_v57 = vcombine.low %v531_v48, %v541_v15  ;;  %v564_v63 = vrot.slane %v562_v50, 5  ;;  %v2805_v58 = vrot.slane %v6506_v8, 5 }
  0x7b   : > { %v2808_v54 = vrot.slane %v6514_v23, 5  ;;  %5745 = vmatprep.mubr.msk.bf16.mxu0 %vm662_vm3, %v5173_v62  ;;  %v550_v6 = vrot.slane %v549_v40, 4  ;;  %v567_v41 = vshrl.u32 %v6742_v33, 16  ;;  %v570_v17 = vshll.u32 %v6742_v33, 16 }
  0x7c   : > { %v560_v7 = vrot.slane %v559_v55, 4  ;;  %5591 = vmatprep.mubr.msk.bf16.mxu1 %vm662_vm3, %v4893_v57  ;;  %v2806_v10 = vsel %vm6605_vm7, %v5158_v51, %v2805_v58  ;;  %v2807_v11 = vrot.slane %v2805_v58, 4  ;;  %v576_v8 = vshll.u32 %v6747_v56, 16  ;;  %v5144_v55 = vld [vmem:[%s6353_s24 + $0x60] sm:$0xe] }
  0x7d   : > { %v580_v23 = vshrl.u32 %v6747_v56, 16  ;;  %v555_v18 = vsel %vm6379_vm4, %v550_v6, %v554_v47  ;;  %v569_v25 = vrot.slane %v567_v41, 4  ;;  %v572_v31 = vrot.slane %v570_v17, 5  ;;  %v5145_v6 = vld [vmem:[%s6353_s24 + $0x6c] sm:$0xe] }
  0x7e   : > { %v565_v21 = vsel %vm6379_vm4, %v560_v7, %v564_v63  ;;  %v2809_v1 = vsel %vm6605_vm7, %v2807_v11, %v2808_v54  ;;  %v578_v28 = vrot.slane %v576_v8, 5  ;;  %v586_v34 = vshll.u32 %v225_v61, 16  ;;  %v5082_v11 = vld [vmem:[%s6353_s24 + $0x70] sm:$0xf]  ;;  %v5083_v8 = vld [vmem:[%s6353_s24 + $0x74] sm:$0x1] }
  0x7f   : > { %v4894_v38 = vcombine.low %v555_v18, %v565_v21  ;;  %v582_v60 = vrot.slane %v580_v23, 4  ;;  %v5174_v20 = vcombine.low %v2806_v10, %v2809_v1  ;;  %v573_v44 = vor.u32 %v572_v31, %v569_v25 }
  0x80   : > { %v5159_v45 = vrot.slane %v5143_v2, 9  ;;  %v2812_v26 = vrot.slane %v6537_v4, 5  ;;  %v2815_v48 = vrot.slane %v6543_v12, 5  ;;  %v591_v50 = vshrl.u32 %v6762_v14, 16 }
  0x81   : > { %5592 = vmatmul.mubr.msk.bf16.gmra.mrb[24].mxu1 %vm662_vm3, %v4894_v38  ;;  %v583_v47 = vor.u32 %v582_v60, %v578_v28  ;;  %5746 = vmatmul.mubr.msk.bf16.gmra.mrb[8].mxu0 %vm662_vm3, %v5174_v20  ;;  %v574_v51 = vrot.slane %v573_v44, 4  ;;  %v588_v15 = vrot.slane %v586_v34, 5  ;;  %v594_v62 = vshll.u32 %v6762_v14, 16 }
  0x82   : > { %v600_v40 = vshll.u32 %v6771_v42, 16  ;;  %v2813_v4 = vsel %vm6605_vm7, %v5159_v45, %v2812_v26  ;;  %v2814_v12 = vrot.slane %v2812_v26, 4  ;;  %v593_v63 = vrot.slane %v591_v50, 4 }
  0x83   : > { %v584_v57 = vrot.slane %v583_v47, 4  ;;  %v579_v58 = vsel %vm6379_vm4, %v574_v51, %v578_v28  ;;  %v596_v54 = vrot.slane %v594_v62, 5  ;;  %v604_v2 = vshrl.u32 %v6771_v42, 16  ;;  %v5146_v47 = vld [vmem:[%s6353_s24 + $0x78] sm:$0xe] }
  0x84   : > { %v602_v61 = vrot.slane %v600_v40, 5  ;;  %v2816_v41 = vsel %vm6605_vm7, %v2814_v12, %v2815_v48  ;;  %v610_v17 = vshll.u32 %v226_v49, 16  ;;  %v5160_v10 = vrot.slane %v5144_v55, 9  ;;  %v6212_v51 = vld [vmem:[%s6353_s24] sm:$0xf] }
  0x85   : > { %v589_v7 = vsel %vm6379_vm4, %v584_v57, %v588_v15  ;;  %v5175_v18 = vcombine.low %v2813_v4, %v2816_v41  ;;  %v597_v21 = vor.u32 %v596_v54, %v593_v63  ;;  %v606_v25 = vrot.slane %v604_v2, 4  ;;  %v6809_v15 = vld [vmem:[%s6353_s24 + $0x4] sm:$0xf]  ;;  %v6813_v40 = vld [vmem:[%s6353_s24 + $0x7c] sm:$0xf] }
  0x86   : > { %v4895_v23 = vcombine.low %v579_v58, %v589_v7  ;;  %v612_v31 = vrot.slane %v610_v17, 5  ;;  %v2819_v38 = vrot.slane %v6567_v59, 5  ;;  %v2822_v1 = vrot.slane %v6574_v9, 5  ;;  %v6816_v55 = vld [vmem:[%s6353_s24 + $0x80] sm:$0x1] }
  0x87   : > { %v5161_v28 = vrot.slane %v5145_v6, 9  ;;  %5749 = vmatprep.mubr.msk.bf16.mxu0 %vm662_vm3, %v5175_v18  ;;  %v598_v60 = vrot.slane %v597_v21, 4  ;;  %v607_v20 = vor.u32 %v606_v25, %v602_v61  ;;  %v2826_v44 = vrot.slane %v5082_v11, 5  ;;  %v5088_v57 = vld [vmem:[%s6353_s24 + $0x88] sm:$0xf] }
  0x88   : > { %5595 = vmatprep.mubr.msk.bf16.mxu1 %vm662_vm3, %v4895_v23  ;;  %v2829_v34 = vrot.slane %v5083_v8, 5  ;;  %v2820_v45 = vsel %vm6605_vm7, %v5160_v10, %v2819_v38  ;;  %v2821_v59 = vrot.slane %v2819_v38, 4  ;;  %v4913_v62 = vcombine.low %v6212_v51, %v6809_v15  ;;  %v5089_v54 = vld [vmem:[%s6353_s24 + $0x8c] sm:$0x1]  ;;  %v5091_v17 = vld [vmem:[%s6353_s24 + $0x94] sm:$0xf] }
  0x89   : > { %v603_v9 = vsel %vm6379_vm4, %v598_v60, %v602_v61  ;;  %v608_v26 = vrot.slane %v607_v20, 4  ;;  %v2827_v48 = vsel %vm6605_vm7, %v5161_v28, %v2826_v44  ;;  %v2828_v49 = vrot.slane %v2826_v44, 4  ;;  %v5147_v61 = vld [vmem:[%s6353_s24 + $0x84] sm:$0xe]  ;;  %v5148_v23 = vld [vmem:[%s6353_s24 + $0x90] sm:$0xe] }
  0x8a   : > { %v2823_v50 = vsel %vm6605_vm7, %v2821_v59, %v2822_v1  ;;  %v5162_v58 = vrot.slane %v5146_v47, 9  ;;  %v2833_v7 = vrot.slane %v6813_v40, 5  ;;  %v2836_v41 = vrot.slane %v6816_v55, 5  ;;  %v5092_v25 = vld [vmem:[%s6353_s24 + $0x98] sm:$0x1] }
  0x8b   : > { %v613_v4 = vsel %vm6379_vm4, %v608_v26, %v612_v31  ;;  %v5176_v12 = vcombine.low %v2820_v45, %v2823_v50  ;;  %v2830_v63 = vsel %vm6605_vm7, %v2828_v49, %v2829_v34  ;;  %v5163_v10 = vrot.slane %v5147_v61, 9  ;;  %v5094_v31 = vld [vmem:[%s6353_s24 + $0xa0] sm:$0xf]  ;;  %v5095_v60 = vld [vmem:[%s6353_s24 + $0xa4] sm:$0x1] }
  0x8c   : > { %v4896_v2 = vcombine.low %v603_v9, %v613_v4  ;;  %v5177_v6 = vcombine.low %v2827_v48, %v2830_v63  ;;  %v2840_v11 = vrot.slane %v5088_v57, 5  ;;  %v2843_v8 = vrot.slane %v5089_v54, 5  ;;  %v5149_v20 = vld [vmem:[%s6353_s24 + $0x9c] sm:$0xe]  ;;  %v6214_v44 = vld [vmem:[%s6353_s24 + $0xc] sm:$0xf] }
  0x8d   : > { %5750 = vmatmul.mubr.msk.bf16.gmra.mrb[12].mxu0 %vm662_vm3, %v5176_v12  ;;  %v2834_v18 = vsel %vm6605_vm7, %v5162_v58, %v2833_v7  ;;  %v2835_v21 = vrot.slane %v2833_v7, 4  ;;  %v2847_v28 = vrot.slane %v5091_v17, 5  ;;  %v6843_v34 = vld [vmem:[%s6353_s24 + $0x10] sm:$0xf]  ;;  %v6216_v47 = vld [vmem:[%s6353_s24 + $0x18] sm:$0xf] }
  0x8e   : > { %5596 = vmatmul.mubr.msk.bf16.gmra.mrb[28].mxu1 %vm662_vm3, %v4896_v2  ;;  %5753 = vmatprep.mubr.msk.bf16.mxu0 %vm662_vm3, %v5177_v6  ;;  %v2841_v38 = vsel %vm6605_vm7, %v5163_v10, %v2840_v11  ;;  %v2842_v1 = vrot.slane %v2840_v11, 4  ;;  %v4914_v45 = vcombine.low %v6214_v44, %v6843_v34  ;;  %v6850_v9 = vld [vmem:[%s6353_s24 + $0x1c] sm:$0xf]  ;;  %v5164_v48 = vrot.slane %v5148_v23, 9  ;;  %v5097_v57 = vld [vmem:[%s6353_s24 + $0xac] sm:$0xf] }
  0x8f   : > { %5601 = vmatprep.mubr.msk.bf16.mxu1 %vm662_vm3, %v4913_v62  ;;  %v2837_v59 = vsel %vm6605_vm7, %v2835_v21, %v2836_v41  ;;  %v4915_v26 = vcombine.low %v6216_v47, %v6850_v9  ;;  %v2849_v51 = vrot.slane %v2847_v28, 4  ;;  %v2850_v62 = vrot.slane %v5092_v25, 5  ;;  %v6218_v54 = vld [vmem:[%s8109_s1 + $0x4] sm:$0x3]  ;;  %v5100_v2 = vld [vmem:[%s6353_s24 + $0xb8] sm:$0xf] }
  0x90   : > { %v5178_v49 = vcombine.low %v2834_v18, %v2837_v59  ;;  %v2844_v50 = vsel %vm6605_vm7, %v2842_v1, %v2843_v8  ;;  %v5165_v12 = vrot.slane %v5149_v20, 9  ;;  %v2854_v63 = vrot.slane %v5094_v31, 5  ;;  %v6865_v7 = vld [vmem:[%s8109_s1 + $0x6] sm:$0x3]  ;;  %v5098_v10 = vld [vmem:[%s6353_s24 + $0xb0] sm:$0x1] }
  0x91   : > { %v5179_v4 = vcombine.low %v2841_v38, %v2844_v50  ;;  %v2857_v58 = vrot.slane %v5095_v60, 5  ;;  %v1428_v61 = vsel %vm711_vm0, %v6218_v54, 0  ;;  %v2848_v41 = vsel %vm6605_vm7, %v5164_v48, %v2847_v28  ;;  %v5150_v11 = vld [vmem:[%s6353_s24 + $0xa8] sm:$0xe]  ;;  %v5101_v25 = vld [vmem:[%s6353_s24 + $0xbc] sm:$0x1] }
  0x92   : > { %v2856_v6 = vrot.slane %v2854_v63, 4  ;;  %v2851_v17 = vsel %vm6605_vm7, %v2849_v51, %v2850_v62  ;;  %v2861_v8 = vrot.slane %v5097_v57, 5  ;;  %v2855_v23 = vsel %vm6605_vm7, %v5165_v12, %v2854_v63  ;;  %v5151_v31 = vld [vmem:[%s6353_s24 + $0xb4] sm:$0xe]  ;;  %v6219_v38 = vld [vmem:[%s6353_s24 + $0x24] sm:$0xf] }
  0x93   : > { %v2868_v21 = vrot.slane %v5100_v2, 5  ;;  %v6886_v1 = vld [vmem:[%s6353_s24 + $0x28] sm:$0xf]  ;;  %v5180_v60 = vcombine.low %v2848_v41, %v2851_v17  ;;  %v5166_v44 = vrot.slane %v5150_v11, 9  ;;  %v2864_v59 = vrot.slane %v5098_v10, 5 }
  0x94   : > { %v2858_v18 = vsel %vm6605_vm7, %v2856_v6, %v2857_v58  ;;  %v4916_v28 = vcombine.low %v6219_v38, %v6886_v1  ;;  %v6221_v47 = vld [vmem:[%s6353_s24 + $0x30] sm:$0xf]  ;;  %v2871_v51 = vrot.slane %v5101_v25, 5  ;;  %v5103_v62 = vld [vmem:[%s6353_s24 + $0xc4] sm:$0xf]  ;;  %v2258_v25 = vshrl.u32 %v6813_v40, 16 }
  0x95   : > { %5754 = vmatmul.mubr.msk.bf16.gmra.mrb[16].mxu0 %vm662_vm3, %v5178_v49  ;;  %v5181_v20 = vcombine.low %v2855_v23, %v2858_v18  ;;  %v5167_v49 = vrot.slane %v5151_v31, 9  ;;  %v2870_v50 = vrot.slane %v2868_v21, 4  ;;  %v2862_v57 = vsel %vm6605_vm7, %v5166_v44, %v2861_v8  ;;  %v5152_v12 = vld [vmem:[%s6353_s24 + $0xc0] sm:$0xe]  ;;  %v6223_v41 = vld [vmem:[%s6353_s24 + $0x3c] sm:$0xf] }
  0x96   : > { %5602 = vmatmul.mubr.msk.bf16.vlgmr.msra.gmra.mrb[0].mxu1 %vm662_vm3, %v4914_v45  ;;  %5757 = vmatprep.mubr.msk.bf16.mxu0 %vm662_vm3, %v5179_v4  ;;  %v2863_v45 = vrot.slane %v2861_v8, 4  ;;  %v2875_v63 = vrot.slane %v5103_v62, 5  ;;  %v5168_v6 = vrot.slane %v5152_v12, 9  ;;  %v6911_v17 = vld [vmem:[%s6353_s24 + $0x40] sm:$0xf]  ;;  %v4919_v18 = vcombine.low %v6518_v27, %v6521_v36  ;;  %v6175_v62 = vld [vmem:[%s6353_s24 + $0x24] sm:$0xff]  }
  0x97   : > { %5634 = vmatpush3.bf16.msra.mxu1 %v1428_v61  ;;  %5605 = vmatprep.mubr.msk.bf16.mxu1 %vm662_vm3, %v4915_v26  ;;  %v6891_v26 = vld [vmem:[%s6353_s24 + $0x34] sm:$0xf]  ;;  %v2869_v58 = vsel %vm6605_vm7, %v5167_v49, %v2868_v21  ;;  %v2872_v54 = vsel %vm6605_vm7, %v2870_v50, %v2871_v51  ;;  %v5104_v61 = vld [vmem:[%s6353_s24 + $0xc8] sm:$0x1]  ;;  %v4918_v10 = vcombine.low %v6223_v41, %v6911_v17  ;;  %v2254_v21 = vshll.u32 %v6813_v40, 16 }
  0x98   : > { %6132 = vmatprep.subr.msk.bf16.mxu1 %vm711_vm0, %v6865_v7  ;;  %v4917_v48 = vcombine.low %v6221_v47, %v6891_v26  ;;  %v2865_v4 = vsel %vm6605_vm7, %v2863_v45, %v2864_v59  ;;  %v5183_v11 = vcombine.low %v2869_v58, %v2872_v54  ;;  %v2877_v8 = vrot.slane %v2875_v63, 4  ;;  %v1168_v45 = vld [vmem:[%s6353_s24] sm:$0xe]  ;;  %v1169_v59 = vld [vmem:[%s6353_s24 + $0xc] sm:$0xe] }
  0x99   : > { %v5182_v2 = vcombine.low %v2862_v57, %v2865_v4  ;;  %v2878_v23 = vrot.slane %v5104_v61, 5  ;;  %v2876_v31 = vsel %vm6605_vm7, %v5168_v6, %v2875_v63  ;;  %v6926_v27 = vrot.slane %v2254_v21, 5  ;;  %v1172_v41 = vld [vmem:[%s6353_s24 + $0x30] sm:$0xe] }
  0x9a   : > { %v2260_v36 = vrot.slane %v2258_v25, 4  ;;  %v4921_v44 = vcombine.low %v6578_v19, %v6584_v35  ;;  %v2264_v47 = vshll.u32 %v6816_v55, 16  ;;  %v4945_v19 = vrot.slane %v1168_v45, 9 }
  0x9b   : > { %v2879_v38 = vsel %vm6605_vm7, %v2877_v8, %v2878_v23  ;;  %8129 = vst [vmem:[#allocation3_spill] sm:$0xff] %v6926_v27  ;;  %v4946_v35 = vrot.slane %v1169_v59, 9  ;;  %v1235_v4 = vrot.slane %v6850_v9, 5  ;;  %v1242_v12 = vrot.slane %v6886_v1, 5  ;;  %v1173_v8 = vld [vmem:[%s6353_s24 + $0x3c] sm:$0xe] }
  0x9c   : > { %v5184_v40 = vcombine.low %v2876_v31, %v2879_v38  ;;  %v2261_v49 = vor.u32 %v2260_v36, %v6926_v27  ;;  %v6946_v51 = vrot.slane %v2264_v47, 5  ;;  %v4922_v58 = vcombine.low %v6599_v0, %v6612_v29  ;;  %v1174_v31 = vld [vmem:[%s6353_s24 + $0x48] sm:$0xe]  ;;  %v6229_v59 = vld [vmem:[%s6353_s24 + $0x38] sm:$0x1] }
  0x9d   : > { %5758 = vmatmul.mubr.msk.bf16.gmra.mrb[20].mxu0 %vm662_vm3, %v5180_v60  ;;  %v4920_v60 = vcombine.low %v6547_v24, %v6553_v37  ;;  %v6226_v24 = vld [vmem:[%s6353_s24 + $0x14] sm:$0x1]  ;;  %v4058_v54 = vsel %vm711_vm0, %v6670_v22, 0  ;;  %v4923_v61 = vcombine.low %v6631_v53, %v6638_v16  ;;  %v4924_v6 = vcombine.low %v6657_v39, %v6665_v43  ;;  %v6227_v16 = vld [vmem:[%s6353_s24 + $0x20] sm:$0x1] }
  0x9e   : > { %5606 = vmatmul.mubr.msk.bf16.gmra.mrb[4].mxu1 %vm662_vm3, %v4916_v28  ;;  %5761 = vmatprep.mubr.msk.bf16.mxu0 %vm662_vm3, %v5181_v20  ;;  %v1228_v28 = vrot.slane %v6843_v34, 5  ;;  %v6173_v20 = vld [vmem:[%s6353_s24 + $0x18] sm:$0xff]   ;;  %v6225_v34 = vld [vmem:[%s6353_s24 + $0x8] sm:$0x1]  ;;  %v1231_v37 = vrot.slane %v6226_v24, 5  ;;  %8130 = vst [vmem:[#allocation4_spill] sm:$0xff] %v6946_v51  ;;  %v4925_v9 = vcombine.low %v6689_v5, %v6701_v30 }
  0x9f   : > { %5609 = vmatprep.mubr.msk.bf16.mxu1 %vm662_vm3, %v4917_v48  ;;  %v1221_v48 = vrot.slane %v6809_v15, 5  ;;  %v1224_v50 = vrot.slane %v6225_v34, 5  ;;  %v1170_v15 = vld [vmem:[%s6353_s24 + $0x18] sm:$0xe]  ;;  %v6951_v63 = vrot.slane %v2261_v49, 4  ;;  %v1238_v22 = vrot.slane %v6227_v16, 5 }
  0xa0   : > { %v1230_v55 = vrot.slane %v1228_v28, 4  ;;  %v4947_v1 = vrot.slane %v1170_v15, 9  ;;  %v6973_v29 = vsel %vm6605_vm7, %v4946_v35, %v1228_v28  ;;  %v1244_v25 = vrot.slane %v1242_v12, 4  ;;  %v5265_v24 = vld [vmem:[%s6353_s24 + $0x18] sm:$0xf] }
  0xa1   : > { %v1223_v57 = vrot.slane %v1221_v48, 4  ;;  %8131 = vst [vmem:[#allocation5_spill] sm:$0xff] %v6951_v63  ;;  %v6969_v0 = vsel %vm6605_vm7, %v4945_v19, %v1221_v48  ;;  %v1252_v47 = vrot.slane %v6229_v59, 5  ;;  %v7010_v49 = vsel %vm711_vm0, %v6865_v7, 0  ;;  %v5266_v7 = vld [vmem:[%s6353_s24 + $0x1c] sm:$0xf] }
  0xa2   : > { %v6977_v53 = vsel %vm6605_vm7, %v1230_v55, %v1231_v37  ;;  %v7014_v34 = vsel %vm6605_vm7, %v4947_v1, %v1235_v4  ;;  %v6179_v37 = vld [vmem:[%s6353_s24 + $0x3c] sm:$0xff]   ;;  %v4950_v35 = vrot.slane %v1173_v8, 9  ;;  %v6230_v55 = vld [vmem:[%s6353_s24 + $0x44] sm:$0x1]  ;;  %v3581_v8 = vshll.u32 %v5265_v24, 16 }
  0xa3   : > { %v6988_v23 = vsel %vm6605_vm7, %v1223_v57, %v1224_v50  ;;  %v1175_v50 = vld [vmem:[%s6353_s24 + $0x54] sm:$0xe]  ;;  %v1259_v15 = vrot.slane %v6230_v55, 5  ;;  %v5269_v39 = vld [vmem:[%s6353_s24 + $0x28] sm:$0xf] }
  0xa4   : > { %v6237_v5 = vld [vmem:[%s6353_s24 + $0x70] sm:$0xf] }
  0xa5   : > { %5762 = vmatmul.mubr.msk.bf16.gmra.mrb[24].mxu0 %vm662_vm3, %v5182_v2  ;;  %v1171_v2 = vld [vmem:[%s6353_s24 + $0x24] sm:$0xe]  ;;  %v1284_v30 = vrot.slane %v6237_v5, 5 }
  0xa6   : > { %5610 = vmatmul.mubr.msk.bf16.gmra.mrb[8].mxu1 %vm662_vm3, %v4918_v10  ;;  %5765 = vmatprep.mubr.msk.bf16.mxu0 %vm662_vm3, %v5183_v11  ;;  %v1249_v10 = vrot.slane %v6891_v26, 5  ;;  %v6177_v11 = vld [vmem:[%s6353_s24 + $0x30] sm:$0xff]   ;;  %v4948_v21 = vrot.slane %v1171_v2, 9 }
  0xa7   : > { %5613 = vmatprep.mubr.msk.bf16.mxu1 %vm662_vm3, %v4919_v18  ;;  %v6984_v26 = vld [vmem:[%s8109_s1 + $0x10] sm:$0x3]  ;;  %v1237_v18 = vrot.slane %v1235_v4, 4  ;;  %v1286_v48 = vrot.slane %v1284_v30, 4 }
  0xa8   : > { %v1251_v45 = vrot.slane %v1249_v10, 4  ;;  %v7021_v19 = vsel %vm6605_vm7, %v4948_v21, %v1242_v12  ;;  %v3591_v21 = vshrl.u32 %v5266_v7, 16 }
  0xa9   : > { %v7030_v4 = vsel %vm6605_vm7, %v1237_v18, %v1238_v22  ;;  %v3578_v22 = vshrl.u32 %v5265_v24, 16  ;;  %v3587_v18 = vshll.u32 %v5266_v7, 16  ;;  %v5268_v24 = vld [vmem:[%s6353_s24 + $0x24] sm:$0xf] }
  0xaa   : > { %v7043_v1 = vsel %vm6605_vm7, %v1251_v45, %v1252_v47 }
  0xab   : > { %v3580_v43 = vrot.slane %v3578_v22, 4  ;;  %v7085_v7 = vrot.slane %v3587_v18, 5  ;;  %v3605_v22 = vshll.u32 %v5268_v24, 16  ;;  %v3615_v18 = vshrl.u32 %v5269_v39, 16 }
  0xad   : > { %5766 = vmatmul.mubr.msk.bf16.gmra.mrb[28].mxu0 %vm662_vm3, %v5184_v40  ;;  %v6228_v40 = vld [vmem:[%s6353_s24 + $0x2c] sm:$0x1]  ;;  %v3607_v27 = vrot.slane %v3605_v22, 5 }
  0xae   : > { %5614 = vmatmul.mubr.msk.bf16.gmra.mrb[12].mxu1 %vm662_vm3, %v4920_v60  ;;  %5771 = vmatprep.mubr.msk.bf16.mxu0 %vm662_vm3, %v6173_v20  ;;  %v1245_v28 = vrot.slane %v6228_v40, 5  ;;  %v1256_v60 = vrot.slane %v6911_v17, 5  ;;  %v6233_v40 = vld [vmem:[%s6353_s24 + $0x50] sm:$0x1]  ;;  %v6238_v17 = vld [vmem:[%s6353_s24 + $0x74] sm:$0x1] }
  0xaf   : > { %5617 = vmatprep.mubr.msk.bf16.mxu1 %vm662_vm3, %v4921_v44  ;;  %v4949_v44 = vrot.slane %v1172_v41, 9  ;;  %v4952_v41 = vrot.slane %v1175_v50, 9  ;;  %v1176_v50 = vld [vmem:[%s6353_s24 + $0x60] sm:$0xe]  ;;  %v5270_v20 = vld [vmem:[%s6353_s24 + $0x2c] sm:$0x1] }
  0xb0   : > { %v1258_v12 = vrot.slane %v1256_v60, 4  ;;  %v7056_v45 = vsel %vm6605_vm7, %v4950_v35, %v1256_v60  ;;  %v6234_v35 = vld [vmem:[%s6353_s24 + $0x5c] sm:$0x1] }
  0xb1   : > { %v7039_v2 = vsel %vm6605_vm7, %v4949_v44, %v1249_v10  ;;  %v1273_v55 = vrot.slane %v6234_v35, 5  ;;  %v1177_v35 = vld [vmem:[%s6353_s24 + $0x6c] sm:$0xe] }
  0xb2   : > { %v7060_v59 = vsel %vm6605_vm7, %v1258_v12, %v1259_v15  ;;  %v6235_v15 = vld [vmem:[%s6353_s24 + $0x64] sm:$0xf]  ;;  %v3593_v12 = vrot.slane %v3591_v21, 4  ;;  %v4954_v5 = vrot.slane %v1177_v35, 9 }
  0xb3   : > { %v6185_v21 = vld [vmem:[%s6353_s24 + $0x60] sm:$0xff]  }
  0xb5   : > { %5772 = vmatmul.mubr.msk.bf16.vlgmr.msra.gmra.mrb[0].mxu0 %vm662_vm3, %v6175_v62  ;;  %v6231_v62 = vld [vmem:[%s6353_s24 + $0x4c] sm:$0xf] }
  0xb6   : > { %5618 = vmatmul.mubr.msk.bf16.gmra.mrb[16].mxu1 %vm662_vm3, %v4922_v58  ;;  %5804 = vmatpush3.bf16.msra.mxu0 %v4058_v54  ;;  %v1263_v57 = vrot.slane %v6231_v62, 5  ;;  %v7034_v58 = vsel %vm6605_vm7, %v1244_v25, %v1245_v28  ;;  %v4951_v54 = vrot.slane %v1174_v31, 9  ;;  %v1266_v28 = vrot.slane %v6233_v40, 5 }
  0xb7   : > { %5621 = vmatprep.mubr.msk.bf16.mxu1 %vm662_vm3, %v4923_v61  ;;  %5775 = vmatprep.mubr.msk.bf16.mxu0 %vm662_vm3, %v6177_v11  ;;  %v6181_v61 = vld [vmem:[%s6353_s24 + $0x48] sm:$0xff]   ;;  %v6232_v11 = vld [vmem:[%s6353_s24 + $0x58] sm:$0xf]  ;;  %v1277_v62 = vrot.slane %v6235_v15, 5  ;;  %v5272_v15 = vld [vmem:[%s6353_s24 + $0x34] sm:$0xf] }
  0xb8   : > { %6138 = vmatprep.subr.msk.bf16.mxu0 %vm711_vm0, %v6984_v26  ;;  %v1270_v16 = vrot.slane %v6232_v11, 5  ;;  %v1265_v31 = vrot.slane %v1263_v57, 4  ;;  %v7064_v47 = vsel %vm6605_vm7, %v4951_v54, %v1263_v57  ;;  %v5267_v57 = vld [vmem:[%s6353_s24 + $0x20] sm:$0x1]  ;;  %v5271_v54 = vld [vmem:[%s6353_s24 + $0x30] sm:$0xf] }
  0xb9   : > { %v4953_v11 = vrot.slane %v1176_v50, 9  ;;  %v3629_v50 = vshll.u32 %v5271_v54, 16  ;;  %v3597_v25 = vshll.u32 %v5267_v57, 16  ;;  %v3635_v36 = vshll.u32 %v5272_v15, 16 }
  0xba   : > { %v7075_v60 = vsel %vm6605_vm7, %v4952_v41, %v1270_v16  ;;  %v7091_v41 = vsel %vm6605_vm7, %v1265_v31, %v1266_v28  ;;  %v1279_v31 = vrot.slane %v1277_v62, 4  ;;  %v3626_v28 = vshrl.u32 %v5271_v54, 16 }
  0xbb   : > { %v7133_v35 = vrot.slane %v3635_v36, 5 }
  0xbd   : > { %5776 = vmatmul.mubr.msk.bf16.gmra.mrb[4].mxu0 %vm662_vm3, %v6179_v37  ;;  %v1272_v37 = vrot.slane %v1270_v16, 4  ;;  %v6236_v16 = vld [vmem:[%s6353_s24 + $0x68] sm:$0x1] }
  0xbe   : > { %5622 = vmatmul.mubr.msk.bf16.gmra.mrb[20].mxu1 %vm662_vm3, %v4924_v6  ;;  %5779 = vmatprep.mubr.msk.bf16.mxu0 %vm662_vm3, %v6181_v61  ;;  %v3583_v6 = vrot.slane %v3581_v8, 5  ;;  %v6183_v61 = vld [vmem:[%s6353_s24 + $0x54] sm:$0xff]   ;;  %v1280_v40 = vrot.slane %v6236_v16, 5  ;;  %v3611_v8 = vshll.u32 %v5269_v39, 16  ;;  %v3594_v16 = vor.u32 %v3593_v12, %v7085_v7 }
  0xbf   : > { %5625 = vmatprep.mubr.msk.bf16.mxu1 %vm662_vm3, %v4925_v9  ;;  %v3602_v9 = vshrl.u32 %v5268_v24, 16  ;;  %v7100_v44 = vsel %vm6605_vm7, %v1272_v37, %v1273_v55  ;;  %v1287_v24 = vrot.slane %v6238_v17, 5  ;;  %v3639_v39 = vshrl.u32 %v5272_v15, 16 }
  0xc0   : > { %v3584_v10 = vor.u32 %v3583_v6, %v3580_v43  ;;  %v7106_v37 = vrot.slane %v3611_v8, 5  ;;  %v3617_v55 = vrot.slane %v3615_v18, 4  ;;  %v8132_v43 = vcombine.low %v6710_v52, %v6721_v46  ;;  %v6239_v8 = vld [vmem:[%s6353_s24 + $0x7c] sm:$0xf]  ;;  %v7142_v18 = vld [vmem:[%s6353_s24 + $0x38] sm:$0x1] }
  0xc1   : > { %v3604_v38 = vrot.slane %v3602_v9, 4  ;;  %v7115_v17 = vsel %vm6605_vm7, %v4953_v11, %v1277_v62  ;;  %v7119_v57 = vsel %vm6605_vm7, %v1279_v31, %v1280_v40  ;;  %v3628_v6 = vrot.slane %v3626_v28, 4  ;;  %8134 = vst [vmem:[#allocation6_spill] sm:$0xff] %v7142_v18 }
  0xc2   : > { %v3631_v12 = vrot.slane %v3629_v50, 5  ;;  %v8133_v52 = vcombine.low %v6742_v33, %v6747_v56  ;;  %v3585_v46 = vrot.slane %v3584_v10, 4  ;;  %v3595_v54 = vrot.slane %v3594_v16, 4  ;;  %v6187_v33 = vld [vmem:[%s6353_s24 + $0x6c] sm:$0xff]   ;;  %v1179_v16 = vld [vmem:[%s6353_s24 + $0x84] sm:$0xe] }
  0xc3   : > { %v3621_v62 = vshll.u32 %v5270_v20, 16  ;;  %v7127_v11 = vsel %vm6605_vm7, %v4954_v5, %v1284_v30  ;;  %v7131_v40 = vsel %vm6605_vm7, %v1286_v48, %v1287_v24  ;;  %v3641_v9 = vrot.slane %v3639_v39, 4  ;;  %v6188_v48 = vld [vmem:[%s6353_s24 + $0x78] sm:$0xff]  }
  0xc4   : > { %v3608_v10 = vor.u32 %v3607_v27, %v3604_v38  ;;  %v3618_v20 = vor.u32 %v3617_v55, %v7106_v37  ;;  %v1291_v30 = vrot.slane %v6239_v8, 5  ;;  %v3632_v38 = vor.u32 %v3631_v12, %v3628_v6  ;;  %v5274_v5 = vld [vmem:[%s6353_s24 + $0x3c] sm:$0xf] }
  0xc5   : > { %5780 = vmatmul.mubr.msk.bf16.gmra.mrb[8].mxu0 %vm662_vm3, %v6183_v61  ;;  %v3599_v61 = vrot.slane %v3597_v25, 5  ;;  %v1178_v25 = vld [vmem:[%s6353_s24 + $0x78] sm:$0xe]  ;;  %v7158_v50 = vrot.slane %v3621_v62, 5  ;;  %v3642_v39 = vor.u32 %v3641_v9, %v7133_v35  ;;  %v3645_v55 = vshll.u32 %v7142_v18, 16 }
  0xc6   : > { %5626 = vmatmul.mubr.msk.bf16.gmra.mrb[24].mxu1 %vm662_vm3, %v8132_v43  ;;  %5783 = vmatprep.mubr.msk.bf16.mxu0 %vm662_vm3, %v6185_v21  ;;  %v3590_v21 = vsel %vm6379_vm4, %v3585_v46, %v7085_v7  ;;  %v4955_v24 = vrot.slane %v1178_v25, 9  ;;  %v6240_v43 = vld [vmem:[%s6353_s24 + $0x88] sm:$0xf]  ;;  %v7166_v7 = vld [vmem:[%s6353_s24 + $0x40] sm:$0xf]  ;;  %v3609_v12 = vrot.slane %v3608_v10, 4  ;;  %v8136_v62 = vcombine.low %v6762_v14, %v6771_v42 }
  0xc7   : > { %5629 = vmatprep.mubr.msk.bf16.mxu1 %vm662_vm3, %v8133_v52  ;;  %v3600_v31 = vsel %vm6379_vm4, %v3595_v54, %v3599_v61  ;;  %v1298_v6 = vrot.slane %v6240_v43, 5  ;;  %8135 = vst [vmem:[#allocation7_spill] sm:$0xff] %v7166_v7  ;;  %v3619_v52 = vrot.slane %v3618_v20, 4  ;;  %v1293_v46 = vrot.slane %v1291_v30, 4  ;;  %v6241_v54 = vld [vmem:[%s6353_s24 + $0x80] sm:$0x1] }
  0xc8   : > { %v1294_v61 = vrot.slane %v6241_v54, 5  ;;  %v3633_v9 = vrot.slane %v3632_v38, 4  ;;  %v4956_v25 = vrot.slane %v1179_v16, 9  ;;  %v3650_v8 = vshrl.u32 %v5274_v5, 16  ;;  %v6189_v10 = vld [vmem:[%s6353_s24 + $0x84] sm:$0xff]  }
  0xc9   : > { %v3653_v43 = vshll.u32 %v5274_v5, 16  ;;  %v7180_v20 = vcombine.low %v3590_v21, %v3600_v31  ;;  %v7184_v14 = vsel %vm711_vm0, %v6984_v26, 0  ;;  %v3663_v38 = vshrl.u32 %v7166_v7, 16  ;;  %v6190_v21 = vld [vmem:[%s6353_s24 + $0x90] sm:$0xff]   ;;  %v6246_v18 = vld [vmem:[%s6353_s24 + $0xa0] sm:$0xf] }
  0xca   : > { %v3643_v16 = vrot.slane %v3642_v39, 4  ;;  %v3647_v5 = vrot.slane %v3645_v55, 5  ;;  %v1300_v54 = vrot.slane %v1298_v6, 4  ;;  %v3614_v31 = vsel %vm6379_vm4, %v3609_v12, %v7106_v37 }
  0xcb   : > { %v3624_v26 = vsel %vm6379_vm4, %v3619_v52, %v7158_v50  ;;  %v7199_v39 = vsel %vm6605_vm7, %v4955_v24, %v1291_v30  ;;  %v7203_v55 = vsel %vm6605_vm7, %v1293_v46, %v1294_v61  ;;  %v3638_v37 = vsel %vm6379_vm4, %v3633_v9, %v7133_v35  ;;  %v5280_v30 = vld [vmem:[%s6353_s24 + $0x54] sm:$0xf]  ;;  %v7220_v24 = vld [vmem:[%s6353_s24 + $0x58] sm:$0xf]  ;;  %v7225_v61 = vld [vmem:[%s6353_s24 + $0x90] sm:$0xe] }
  0xcc   : > { %v7216_v12 = vsel %vm6605_vm7, %v4956_v25, %v1298_v6  ;;  %v3652_v50 = vrot.slane %v3650_v8, 4  ;;  %v3655_v52 = vrot.slane %v3653_v43, 5  ;;  %v3665_v46 = vrot.slane %v3663_v38, 4 }
  0xcd   : > { %5784 = vmatmul.mubr.msk.bf16.gmra.mrb[12].mxu0 %vm662_vm3, %v6187_v33  ;;  %v8137_v33 = vcombine.low %v6969_v0, %v6988_v23  ;;  %v6242_v0 = vld [vmem:[%s6353_s24 + $0x8c] sm:$0x1]  ;;  %v3648_v36 = vsel %vm6379_vm4, %v3643_v16, %v3647_v5  ;;  %v3698_v25 = vshrl.u32 %v5280_v30, 16  ;;  %v3701_v8 = vshll.u32 %v5280_v30, 16 }
  0xce   : > { %5630 = vmatmul.mubr.msk.bf16.gmra.mrb[28].mxu1 %vm662_vm3, %v8136_v62  ;;  %5787 = vmatprep.mubr.msk.bf16.mxu0 %vm662_vm3, %v6188_v48  ;;  %v3659_v48 = vshll.u32 %v7166_v7, 16  ;;  %v1301_v23 = vrot.slane %v6242_v0, 5  ;;  %v5277_v62 = vld [vmem:[%s6353_s24 + $0x48] sm:$0xf]  ;;  %v7209_v0 = vld [vmem:[%s6353_s24 + $0x4c] sm:$0xf]  ;;  %v8139_v38 = vcombine.low %v6973_v29, %v6977_v53  ;;  %v7243_v16 = vcombine.low %v3614_v31, %v3624_v26 }
  0xcf   : > { %5635 = vmatprep.mubr.msk.bf16.mxu1 %vm662_vm3, %v8137_v33  ;;  %v7206_v33 = vld [vmem:[%s6353_s24 + $0x44] sm:$0x1]  ;;  %v3674_v27 = vshrl.u32 %v5277_v62, 16  ;;  %v3677_v15 = vshll.u32 %v5277_v62, 16  ;;  %v3683_v6 = vshll.u32 %v7209_v0, 16  ;;  %v3687_v9 = vshrl.u32 %v7209_v0, 16 }
  0xd0   : > { %8138 = vst [vmem:[#allocation8_spill] sm:$0xff] %v7206_v33  ;;  %v7222_v28 = vrot.slane %v3659_v48, 5  ;;  %v7231_v35 = vsel %vm6605_vm7, %v1300_v54, %v1301_v23  ;;  %v3707_v43 = vshll.u32 %v7220_v24, 16  ;;  %v3711_v48 = vshrl.u32 %v7220_v24, 16  ;;  %v5283_v31 = vld [vmem:[%s6353_s24 + $0x60] sm:$0xf] }
  0xd1   : > { %v3669_v5 = vshll.u32 %v7206_v33, 16  ;;  %v4957_v54 = vrot.slane %v7225_v61, 9  ;;  %v8140_v23 = vcombine.low %v7014_v34, %v7030_v4  ;;  %v7254_v29 = vcombine.low %v3638_v37, %v3648_v36  ;;  %v6191_v26 = vld [vmem:[%s6353_s24 + $0x9c] sm:$0xff]   ;;  %v6192_v30 = vld [vmem:[%s6353_s24 + $0xa8] sm:$0xff]  }
  0xd2   : > { %v3656_v53 = vor.u32 %v3655_v52, %v3652_v50  ;;  %v3676_v62 = vrot.slane %v3674_v27, 4  ;;  %v7265_v34 = vrot.slane %v3683_v6, 5  ;;  %v3689_v4 = vrot.slane %v3687_v9, 4  ;;  %v6243_v36 = vld [vmem:[%s8109_s1 + $0x8] sm:$0x3] }
  0xd3   : > { %v3700_v27 = vrot.slane %v3698_v25, 4  ;;  %v3703_v37 = vrot.slane %v3701_v8, 5  ;;  %v7274_v50 = vrot.slane %v3707_v43, 5  ;;  %v3713_v52 = vrot.slane %v3711_v48, 4  ;;  %v6244_v6 = vld [vmem:[%s6353_s24 + $0x94] sm:$0xf] }
  0xd4   : > { %v7280_v9 = vld [vmem:[%s6353_s24 + $0x64] sm:$0xf]  ;;  %v3722_v61 = vshrl.u32 %v5283_v31, 16  ;;  %v7282_v22 = vrot.slane %v3656_v53, 4  ;;  %v1312_v25 = vrot.slane %v6246_v18, 5  ;;  %v3690_v43 = vor.u32 %v3689_v4, %v7265_v34 }
  0xd5   : > { %5788 = vmatmul.mubr.msk.bf16.gmra.mrb[16].mxu0 %vm662_vm3, %v6189_v10  ;;  %8141 = vst [vmem:[#allocation9_spill] sm:$0xff] %v7280_v9  ;;  %v3725_v10 = vshll.u32 %v5283_v31, 16  ;;  %v3704_v31 = vor.u32 %v3703_v37, %v3700_v27  ;;  %v3714_v53 = vor.u32 %v3713_v52, %v7274_v50  ;;  %v8142_v18 = vcombine.low %v7021_v19, %v7034_v58  ;;  %v6193_v37 = vld [vmem:[%s6353_s24 + $0xb4] sm:$0xff]  }
  0xd6   : > { %5636 = vmatmul.mubr.msk.bf16.vlgmr.msra.gmra.mrb[0].mxu1 %vm662_vm3, %v8139_v38  ;;  %5791 = vmatprep.mubr.msk.bf16.mxu0 %vm662_vm3, %v6190_v21  ;;  %v3679_v21 = vrot.slane %v3677_v15, 5  ;;  %v7263_v38 = vld [vmem:[%s6353_s24 + $0x50] sm:$0x1]  ;;  %v7272_v15 = vld [vmem:[%s6353_s24 + $0x5c] sm:$0x1]  ;;  %v8143_v27 = vcombine.low %v7039_v2, %v7043_v1  ;;  %v1314_v52 = vrot.slane %v1312_v25, 4 }
  0xd7   : > { %5668 = vmatpush3.bf16.msra.mxu1 %v7010_v49  ;;  %5639 = vmatprep.mubr.msk.bf16.mxu1 %vm662_vm3, %v8140_v23  ;;  %v3666_v49 = vor.u32 %v3665_v46, %v7222_v28  ;;  %v7276_v46 = vrot.slane %v3669_v5, 5  ;;  %v1305_v23 = vrot.slane %v6244_v6, 5  ;;  %v3693_v48 = vshll.u32 %v7263_v38, 16  ;;  %v1181_v5 = vld [vmem:[%s6353_s24 + $0x9c] sm:$0xe] }
  0xd8   : > { %6134 = vmatprep.subr.msk.bf16.mxu1 %vm711_vm0, %v6243_v36  ;;  %v6245_v36 = vld [vmem:[%s6353_s24 + $0x98] sm:$0x1]  ;;  %v3680_v7 = vor.u32 %v3679_v21, %v3676_v62  ;;  %v3717_v6 = vshll.u32 %v7272_v15, 16  ;;  %v3735_v62 = vshrl.u32 %v7280_v9, 16  ;;  %v3727_v4 = vrot.slane %v3725_v10, 5 }
  0xd9   : > { %v1308_v33 = vrot.slane %v6245_v36, 5  ;;  %v3667_v8 = vrot.slane %v3666_v49, 4  ;;  %v3731_v36 = vshll.u32 %v7280_v9, 16  ;;  %v7301_v21 = vsel %vm6605_vm7, %v4957_v54, %v1305_v23  ;;  %v7312_v2 = vld [vmem:[%s6353_s24 + $0x68] sm:$0x1] }
  0xda   : > { %v3724_v49 = vrot.slane %v3722_v61, 4  ;;  %v3681_v19 = vrot.slane %v3680_v7, 4  ;;  %v4958_v58 = vrot.slane %v1181_v5, 9  ;;  %v3691_v3 = vrot.slane %v3690_v43, 4  ;;  %8144 = vst [vmem:[#allocation10_spill] sm:$0xff] %v7312_v2  ;;  %v6194_v5 = vld [vmem:[%s6353_s24 + $0xc0] sm:$0xff]  }
  0xdb   : > { %v3695_v54 = vrot.slane %v3693_v48, 5  ;;  %v3719_v63 = vrot.slane %v3717_v6, 5  ;;  %v1319_v61 = vrot.slane %v6747_v56, 5  ;;  %v3705_v10 = vrot.slane %v3704_v31, 4  ;;  %v1183_v31 = vld [vmem:[%s6353_s24 + $0xb4] sm:$0xe] }
  0xdc   : > { %v3715_v51 = vrot.slane %v3714_v53, 4  ;;  %v7314_v1 = vrot.slane %v3731_v36, 5  ;;  %v3737_v7 = vrot.slane %v3735_v62, 4  ;;  %v3662_v43 = vsel %vm6379_vm4, %v7282_v22, %v7222_v28  ;;  %v6248_v62 = vld [vmem:[%s6353_s24 + $0xb0] sm:$0x1] }
  0xdd   : > { %5792 = vmatmul.mubr.msk.bf16.gmra.mrb[20].mxu0 %vm662_vm3, %v6191_v26  ;;  %v1307_v26 = vrot.slane %v1305_v23, 4  ;;  %v1182_v23 = vld [vmem:[%s6353_s24 + $0xa8] sm:$0xe]  ;;  %v3672_v48 = vsel %vm6379_vm4, %v3667_v8, %v7276_v46  ;;  %v3728_v6 = vor.u32 %v3727_v4, %v3724_v49  ;;  %v3686_v53 = vsel %vm6379_vm4, %v3681_v19, %v7265_v34  ;;  %v5286_v46 = vld [vmem:[%s6353_s24 + $0x6c] sm:$0xf] }
  0xde   : > { %5640 = vmatmul.mubr.msk.bf16.gmra.mrb[4].mxu1 %vm662_vm3, %v8142_v18  ;;  %5795 = vmatprep.mubr.msk.bf16.mxu0 %vm662_vm3, %v6192_v30  ;;  %v6247_v18 = vld [vmem:[%s6353_s24 + $0xa4] sm:$0x1]  ;;  %v7334_v36 = vsel %vm6605_vm7, %v4958_v58, %v1312_v25  ;;  %v4959_v28 = vrot.slane %v1182_v23, 9  ;;  %v1321_v8 = vrot.slane %v1319_v61, 4  ;;  %v3741_v49 = vshll.u32 %v7312_v2, 16 }
  0xdf   : > { %5643 = vmatprep.mubr.msk.bf16.mxu1 %vm662_vm3, %v8143_v27  ;;  %v1315_v30 = vrot.slane %v6247_v18, 5  ;;  %v7326_v56 = vsel %vm6605_vm7, %v1307_v26, %v1308_v33  ;;  %v3696_v33 = vsel %vm6379_vm4, %v3691_v3, %v3695_v54  ;;  %v1322_v26 = vrot.slane %v6248_v62, 5  ;;  %v5289_v18 = vld [vmem:[%s6353_s24 + $0x78] sm:$0xf]  ;;  %v7389_v54 = vld [vmem:[%s6353_s24 + $0xbc] sm:$0x1] }
  0xe0   : > { %v3710_v34 = vsel %vm6379_vm4, %v3705_v10, %v7274_v50  ;;  %v3720_v25 = vsel %vm6379_vm4, %v3715_v51, %v3719_v63  ;;  %v3738_v4 = vor.u32 %v3737_v7, %v7314_v1  ;;  %v4960_v27 = vrot.slane %v1183_v31, 9  ;;  %v7363_v51 = vld [vmem:[%s6353_s24 + $0x70] sm:$0xf]  ;;  %v7393_v10 = vld [vmem:[%s6353_s24 + $0x7c] sm:$0xf] }
  0xe1   : > { %v7338_v22 = vsel %vm6605_vm7, %v1314_v52, %v1315_v30  ;;  %v8146_v3 = vcombine.low %v7056_v45, %v7060_v59  ;;  %v7359_v19 = vrot.slane %v3728_v6, 4  ;;  %v1326_v50 = vrot.slane %v6771_v42, 5  ;;  %8147 = vst [vmem:[#allocation12_spill] sm:$0xff] %v7363_v51  ;;  %8149 = vst [vmem:[#allocation13_spill] sm:$0xff] %v7393_v10  ;;  %v5292_v7 = vld [vmem:[%s6353_s24 + $0x84] sm:$0xf] }
  0xe2   : > { %8145 = vst [vmem:[#allocation11_spill] sm:$0xff] %v7338_v22  ;;  %v3746_v63 = vshrl.u32 %v5286_v46, 16  ;;  %v8148_v45 = vcombine.low %v7064_v47, %v7091_v41  ;;  %v7371_v58 = vcombine.low %v3686_v53, %v3696_v33  ;;  %v7377_v42 = vsel %vm6605_vm7, %v4959_v28, %v1319_v61  ;;  %v6195_v61 = vld [vmem:[%s6353_s24 + $0xcc] sm:$0xff]   ;;  %v7405_v31 = vld [vmem:[%s6353_s24 + $0x88] sm:$0xf] }
  0xe3   : > { %v7380_v30 = vcombine.low %v3710_v34, %v3720_v25  ;;  %v7384_v47 = vsel %vm6605_vm7, %v1321_v8, %v1322_v26  ;;  %v7386_v41 = vrot.slane %v3741_v49, 5  ;;  %v3755_v6 = vshll.u32 %v7363_v51, 16  ;;  %8150 = vst [vmem:[#allocation14_spill] sm:$0xff] %v7405_v31  ;;  %v5295_v62 = vld [vmem:[%s6353_s24 + $0x90] sm:$0xf] }
  0xe4   : > { %v7411_v28 = vrot.slane %v1326_v50, 4  ;;  %v7413_v33 = vrot.slane %v3746_v63, 4  ;;  %v3759_v8 = vshrl.u32 %v7363_v51, 16  ;;  %v3770_v26 = vshrl.u32 %v5289_v18, 16  ;;  %v7420_v25 = vld [vmem:[%s6353_s24 + $0x94] sm:$0xf] }
  0xe5   : > { %5796 = vmatmul.mubr.msk.bf16.gmra.mrb[24].mxu0 %vm662_vm3, %v6193_v37  ;;  %v7357_v37 = vcombine.low %v3662_v43, %v3672_v48  ;;  %v7401_v43 = vsel %vm6605_vm7, %v4960_v27, %v1326_v50  ;;  %v3749_v48 = vshll.u32 %v5286_v46, 16  ;;  %v3773_v49 = vshll.u32 %v5289_v18, 16  ;;  %8151 = vst [vmem:[#allocation15_spill] sm:$0xff] %v7420_v25  ;;  %v7458_v2 = vld [vmem:[%s6353_s24 + $0x8c] sm:$0x1] }
  0xe6   : > { %5644 = vmatmul.mubr.msk.bf16.gmra.mrb[8].mxu1 %vm662_vm3, %v8146_v3  ;;  %5799 = vmatprep.mubr.msk.bf16.mxu0 %vm662_vm3, %v6194_v5  ;;  %v7397_v5 = vrot.slane %v3738_v4, 4  ;;  %v3779_v46 = vshll.u32 %v7393_v10, 16  ;;  %v3783_v34 = vshrl.u32 %v7393_v10, 16  ;;  %v3794_v4 = vshrl.u32 %v5292_v7, 16 }
  0xe7   : > { %5647 = vmatprep.mubr.msk.bf16.mxu1 %vm662_vm3, %v8148_v45  ;;  %v3797_v27 = vshll.u32 %v5292_v7, 16  ;;  %v3803_v3 = vshll.u32 %v7405_v31, 16  ;;  %v3807_v50 = vshrl.u32 %v7405_v31, 16  ;;  %v7430_v45 = vld [vmem:[%s6353_s24 + $0x74] sm:$0x1]  ;;  %v3751_v18 = vrot.slane %v3749_v48, 5 }
  0xe8   : > { %v3818_v52 = vshrl.u32 %v5295_v62, 16  ;;  %v3821_v53 = vshll.u32 %v5295_v62, 16  ;;  %v8152_v7 = vcombine.low %v7075_v60, %v7100_v44  ;;  %v3761_v59 = vrot.slane %v3759_v8, 4  ;;  %v5298_v48 = vld [vmem:[%s6353_s24 + $0x9c] sm:$0xf] }
  0xe9   : > { %v3827_v63 = vshll.u32 %v7420_v25, 16  ;;  %v3831_v23 = vshrl.u32 %v7420_v25, 16  ;;  %v8153_v62 = vcombine.low %v7115_v17, %v7119_v57  ;;  %v7448_v44 = vld [vmem:[%s6353_s24 + $0x80] sm:$0x1]  ;;  %v3772_v60 = vrot.slane %v3770_v26, 4 }
  0xea   : > { %8154 = vst [vmem:[#allocation16_spill] sm:$0xff] %v7448_v44  ;;  %v3796_v31 = vrot.slane %v3794_v4, 4  ;;  %v3799_v8 = vrot.slane %v3797_v27, 5  ;;  %v7452_v10 = vrot.slane %v3803_v3, 5  ;;  %v3809_v51 = vrot.slane %v3807_v50, 4 }
  0xeb   : > { %v7455_v25 = vld [vmem:[%s6353_s24 + $0xa0] sm:$0xf]  ;;  %v3820_v17 = vrot.slane %v3818_v52, 4  ;;  %v3823_v57 = vrot.slane %v3821_v53, 5  ;;  %v3845_v9 = vshll.u32 %v5298_v48, 16  ;;  %v3752_v26 = vor.u32 %v3751_v18, %v7413_v33 }
  0xec   : > { %v3789_v27 = vshll.u32 %v7448_v44, 16  ;;  %v7467_v3 = vld [vmem:[%s6353_s24 + $0x98] sm:$0x1]  ;;  %v3851_v50 = vshll.u32 %v7455_v25, 16  ;;  %v3855_v52 = vshrl.u32 %v7455_v25, 16  ;;  %v3800_v22 = vor.u32 %v3799_v8, %v3796_v31 }
  0xed   : > { %5800 = vmatmul.mubr.msk.bf16.gmra.mrb[28].mxu0 %vm662_vm3, %v6195_v61  ;;  %v7438_v61 = vrot.slane %v3755_v6, 5  ;;  %v3785_v6 = vrot.slane %v3783_v34, 4  ;;  %v3833_v34 = vrot.slane %v3831_v23, 4  ;;  %v3813_v33 = vshll.u32 %v7458_v2, 16 }
  0xee   : > { %5648 = vmatmul.mubr.msk.bf16.gmra.mrb[12].mxu1 %vm662_vm3, %v8152_v7  ;;  %5805 = vmatprep.mubr.msk.bf16.mxu0 %vm662_vm3, %v7180_v20  ;;  %v3775_v7 = vrot.slane %v3773_v49, 5  ;;  %v7450_v20 = vrot.slane %v3779_v46, 5  ;;  %v3765_v49 = vshll.u32 %v7430_v45, 16  ;;  %v7462_v46 = vrot.slane %v3827_v63, 5 }
  0xef   : > { %5651 = vmatprep.mubr.msk.bf16.mxu1 %vm662_vm3, %v8153_v62  ;;  %v3842_v62 = vshrl.u32 %v5298_v48, 16  ;;  %v3762_v4 = vor.u32 %v3761_v59, %v7438_v61  ;;  %v3810_v23 = vor.u32 %v3809_v51, %v7452_v10  ;;  %v3824_v59 = vor.u32 %v3823_v57, %v3820_v17  ;;  %v7500_v57 = vld [vmem:[%s6353_s24 + $0xa4] sm:$0x1] }
  0xf0   : > { %v3776_v53 = vor.u32 %v3775_v7, %v3772_v60  ;;  %v3786_v48 = vor.u32 %v3785_v6, %v7450_v20  ;;  %v3847_v18 = vrot.slane %v3845_v9, 5  ;;  %v8155_v44 = vcombine.low %v7127_v11, %v7131_v40 }
  0xf1   : > { %v3844_v63 = vrot.slane %v3842_v62, 4  ;;  %v8156_v31 = vrot.slane %v7389_v54, 5  ;;  %v3767_v51 = vrot.slane %v3765_v49, 5  ;;  %v3834_v60 = vor.u32 %v3833_v34, %v7462_v46  ;;  %v7503_v34 = vld [vmem:[%s6353_s24 + $0xac] sm:$0xf] }
  0xf2   : > { %v3837_v9 = vshll.u32 %v7467_v3, 16  ;;  %v8157_v11 = vcombine.low %v7199_v39, %v7203_v55  ;;  %v3753_v40 = vrot.slane %v3752_v26, 4  ;;  %v7496_v54 = vrot.slane %v3851_v50, 5 }
  0xf3   : > { %v3777_v7 = vrot.slane %v3776_v53, 4  ;;  %v3787_v6 = vrot.slane %v3786_v48, 4  ;;  %v3791_v8 = vrot.slane %v3789_v27, 5  ;;  %v3815_v17 = vrot.slane %v3813_v33, 5  ;;  %v7513_v48 = vld [vmem:[%s6353_s24 + $0xb0] sm:$0x1] }
  0xf4   : > { %v3801_v39 = vrot.slane %v3800_v22, 4  ;;  %v3811_v55 = vrot.slane %v3810_v23, 4  ;;  %v3825_v62 = vrot.slane %v3824_v59, 4  ;;  %v3848_v49 = vor.u32 %v3847_v18, %v3844_v63 }
  0xf5   : > { %5806 = vmatmul.mubr.msk.bf16.vlgmr.msra.gmra.mrb[0].mxu0 %vm662_vm3, %v7243_v16  ;;  %v7486_v16 = vsel %vm6605_vm7, %v7411_v28, %v8156_v31  ;;  %v3857_v28 = vrot.slane %v3855_v52, 4  ;;  %v3839_v26 = vrot.slane %v3837_v9, 5  ;;  %v3758_v52 = vsel %vm6379_vm4, %v3753_v40, %v7438_v61 }
  0xf6   : > { %5652 = vmatmul.mubr.msk.bf16.gmra.mrb[16].mxu1 %vm662_vm3, %v8155_v44  ;;  %5838 = vmatpush3.bf16.msra.mxu0 %v7184_v14  ;;  %v3763_v14 = vrot.slane %v3762_v4, 4  ;;  %v5301_v44 = vld [vmem:[%s6353_s24 + $0xa8] sm:$0xf]  ;;  %v3861_v22 = vshll.u32 %v7500_v57, 16  ;;  %v3782_v33 = vsel %vm6379_vm4, %v3777_v7, %v7450_v20  ;;  %v3792_v23 = vsel %vm6379_vm4, %v3787_v6, %v3791_v8 }
  0xf7   : > { %5655 = vmatprep.mubr.msk.bf16.mxu1 %vm662_vm3, %v8157_v11  ;;  %5809 = vmatprep.mubr.msk.bf16.mxu0 %vm662_vm3, %v7254_v29  ;;  %v3835_v29 = vrot.slane %v3834_v60, 4  ;;  %v3866_v4 = vshrl.u32 %v5301_v44, 16  ;;  %v3869_v50 = vshll.u32 %v5301_v44, 16  ;;  %v3858_v53 = vor.u32 %v3857_v28, %v7496_v54  ;;  %v5349_v11 = vld [vmem:[%s6353_s24 + $0x48] sm:$0xe] }
  0xf8   : > { %v3768_v27 = vsel %vm6379_vm4, %v3763_v14, %v3767_v51  ;;  %v3875_v59 = vshll.u32 %v7503_v34, 16  ;;  %v3879_v61 = vshrl.u32 %v7503_v34, 16  ;;  %v3806_v63 = vsel %vm6379_vm4, %v3801_v39, %v7452_v10  ;;  %v7578_v39 = vld [vmem:[%s6353_s24 + $0xb8] sm:$0xf] }
  0xf9   : > { %v3816_v18 = vsel %vm6379_vm4, %v3811_v55, %v3815_v17  ;;  %v3830_v20 = vsel %vm6379_vm4, %v3825_v62, %v7462_v46  ;;  %v3849_v31 = vrot.slane %v3848_v49, 4  ;;  %v8158_v51 = vcombine.low %v7216_v12, %v7231_v35 }
  0xfa   : > { %v3868_v10 = vrot.slane %v3866_v4, 4  ;;  %v3871_v60 = vrot.slane %v3869_v50, 5  ;;  %v3885_v9 = vshll.u32 %v7513_v48, 16  ;;  %v8159_v46 = vcombine.low %v7301_v21, %v7326_v56  ;;  %v5304_v21 = vld [vmem:[%s6353_s24 + $0xb4] sm:$0xf] }
  0xfb   : > { %v4975_v12 = vcombine.low %v7377_v42, %v7384_v47  ;;  %v8160_v35 = vsel %vm6379_vm4, %v7397_v5, %v7386_v41  ;;  %v3859_v14 = vrot.slane %v3858_v53, 4  ;;  %v3863_v28 = vrot.slane %v3861_v22, 5  ;;  %v5351_v4 = vld [vmem:[%s6353_s24 + $0x60] sm:$0xe]  ;;  %v5352_v53 = vld [vmem:[%s6353_s24 + $0x6c] sm:$0xe] }
  0xfc   : > { %v4976_v56 = vcombine.low %v7401_v43, %v7486_v16  ;;  %v7561_v44 = vcombine.low %v3758_v52, %v3768_v27  ;;  %v7563_v42 = vrot.slane %v3875_v59, 5  ;;  %v3881_v47 = vrot.slane %v3879_v61, 4  ;;  %v8169_v16 = vld [vmem:[#allocation4_spill] sm:$0xff] }
  0xfd   : > { %5810 = vmatmul.mubr.msk.bf16.gmra.mrb[4].mxu0 %vm662_vm3, %v7357_v37  ;;  %v3840_v37 = vsel %vm6379_vm4, %v3835_v29, %v3839_v26  ;;  %v7565_v41 = vcombine.low %v3782_v33, %v3792_v23  ;;  %v7567_v5 = vcombine.low %v3806_v63, %v3816_v18  ;;  %v3854_v6 = vsel %vm6379_vm4, %v3849_v31, %v7496_v54  ;;  %v8162_v23 = vld [vmem:[#allocation11_spill] sm:$0xff]  ;;  %v5307_v63 = vld [vmem:[%s6353_s24 + $0xc0] sm:$0xf]  ;;  %v8164_v18 = vld [vmem:[#allocation9_spill] sm:$0xff] }
  0xfe   : > { %5656 = vmatmul.mubr.msk.bf16.gmra.mrb[20].mxu1 %vm662_vm3, %v8158_v51  ;;  %5813 = vmatprep.mubr.msk.bf16.mxu0 %vm662_vm3, %v7371_v58  ;;  %v8161_v58 = vsel %vm6379_vm4, %v7359_v19, %v7314_v1  ;;  %v7569_v7 = vcombine.low %v3830_v20, %v3840_v37  ;;  %v5365_v1 = vrot.slane %v5349_v11, 9  ;;  %v5350_v19 = vld [vmem:[%s6353_s24 + $0x54] sm:$0xe]  ;;  %v3872_v8 = vor.u32 %v3871_v60, %v3868_v10  ;;  %v8165_v31 = vld [vmem:[#allocation10_spill] sm:$0xff] }
  0xff   : > { %5659 = vmatprep.mubr.msk.bf16.mxu1 %vm662_vm3, %v8159_v46  ;;  %v5319_v40 = vcombine.low %v8161_v58, %v8160_v35  ;;  %v7575_v17 = vrot.slane %v3885_v9, 5  ;;  %v3890_v55 = vshrl.u32 %v5304_v21, 16  ;;  %v3864_v62 = vsel %vm6379_vm4, %v3859_v14, %v3863_v28  ;;  %v8166_v9 = vld [vmem:[#allocation12_spill] sm:$0xff]  ;;  %v7627_v35 = vld [vmem:[%s6353_s24 + $0xbc] sm:$0x1] }
 0x100   : > { %v3893_v49 = vshll.u32 %v5304_v21, 16  ;;  %v4347_v29 = vrot.slane %v7209_v0, 5  ;;  %v4350_v26 = vrot.slane %v7263_v38, 5  ;;  %v3882_v50 = vor.u32 %v3881_v47, %v7563_v42  ;;  %v7630_v58 = vld [vmem:[%s6353_s24 + $0xc4] sm:$0xf] }
 0x101   : > { %v5366_v52 = vrot.slane %v5350_v19, 9  ;;  %v4354_v54 = vrot.slane %v7220_v24, 5  ;;  %v4357_v27 = vrot.slane %v7272_v15, 5  ;;  %v3899_v22 = vshll.u32 %v7578_v39, 16  ;;  %v5353_v19 = vld [vmem:[%s6353_s24 + $0x78] sm:$0xe] }
 0x102   : > { %v3903_v33 = vshrl.u32 %v7578_v39, 16  ;;  %v7595_v0 = vsel %vm6605_vm7, %v5365_v1, %v4347_v29  ;;  %v4349_v38 = vrot.slane %v4347_v29, 4  ;;  %v8163_v59 = vcombine.low %v7334_v36, %v8162_v23  ;;  %v8167_v23 = vld [vmem:[#allocation13_spill] sm:$0xff] }
 0x103   : > { %v7602_v24 = vcombine.low %v3854_v6, %v3864_v62  ;;  %v7606_v15 = vsel %vm6605_vm7, %v5366_v52, %v4354_v54  ;;  %v5367_v61 = vrot.slane %v5351_v4, 9  ;;  %v4361_v20 = vrot.slane %v8164_v18, 5  ;;  %v6196_v6 = vld [vmem:[%s6353_s24 + $0xc] sm:$0xff]  }
 0x104   : > { %v7612_v36 = vsel %vm6605_vm7, %v4349_v38, %v4350_v26  ;;  %v4364_v51 = vrot.slane %v8165_v31, 5  ;;  %v5368_v37 = vrot.slane %v5352_v53, 9  ;;  %v4368_v11 = vrot.slane %v8166_v9, 5 }
 0x105   : > { %5814 = vmatmul.mubr.msk.bf16.gmra.mrb[8].mxu0 %vm662_vm3, %v7380_v30  ;;  %v4356_v30 = vrot.slane %v4354_v54, 4  ;;  %v5381_v10 = vcombine.low %v7595_v0, %v7612_v36  ;;  %v4371_v46 = vrot.slane %v7430_v45, 5  ;;  %v7636_v14 = vsel %vm6605_vm7, %v5367_v61, %v4361_v20 }
 0x106   : > { %5660 = vmatmul.mubr.msk.bf16.gmra.mrb[24].mxu1 %vm662_vm3, %v8163_v59  ;;  %5817 = vmatprep.mubr.msk.bf16.mxu0 %vm662_vm3, %v5319_v40  ;;  %v4363_v28 = vrot.slane %v4361_v20, 4  ;;  %v7638_v21 = vrot.slane %v3890_v55, 4  ;;  %v3914_v47 = vshrl.u32 %v5307_v63, 16  ;;  %v7642_v45 = vsel %vm6605_vm7, %v5368_v37, %v4368_v11  ;;  %v5084_v55 = vld [vmem:[%s6353_s24 + $0x78] sm:$0xf]  ;;  %v8168_v59 = vld [vmem:[#allocation16_spill] sm:$0xff] }
 0x107   : > { %5663 = vmatprep.mubr.msk.bf16.mxu1 %vm662_vm3, %v4975_v12  ;;  %v7620_v60 = vsel %vm6605_vm7, %v4356_v30, %v4357_v27  ;;  %v7624_v12 = vrot.slane %v3872_v8, 4  ;;  %v4370_v1 = vrot.slane %v4368_v11, 4  ;;  %v7646_v8 = vrot.slane %v3882_v50, 4 }
 0x108   : > { %v5382_v40 = vcombine.low %v7606_v15, %v7620_v60  ;;  %v7648_v62 = vrot.slane %v3893_v49, 5  ;;  %v3917_v29 = vshll.u32 %v5307_v63, 16  ;;  %v7652_v26 = vsel %vm6605_vm7, %v4363_v28, %v4364_v51  ;;  %v8171_v28 = vld [vmem:[#allocation14_spill] sm:$0xff] }
 0x109   : > { %v7655_v4 = vrot.slane %v3899_v22, 5  ;;  %v7657_v52 = vrot.slane %v3903_v33, 4  ;;  %v5383_v54 = vcombine.low %v7636_v14, %v7652_v26  ;;  %v7663_v27 = vsel %vm6605_vm7, %v4370_v1, %v4371_v46  ;;  %v5354_v33 = vld [vmem:[%s6353_s24 + $0x84] sm:$0xe]  ;;  %v6197_v1 = vld [vmem:[%s6353_s24 + $0x18] sm:$0xff]  }
 0x10a   : > { %v3909_v49 = vshll.u32 %v7627_v35, 16  ;;  %v3923_v50 = vshll.u32 %v7630_v58, 16  ;;  %v5384_v53 = vcombine.low %v7642_v45, %v7663_v27  ;;  %v5369_v22 = vrot.slane %v5353_v19, 9  ;;  %v6259_v60 = vld [vmem:[%s6353_s24 + $0xa0] sm:$0xf] }
 0x10b   : > { %v3916_v38 = vrot.slane %v3914_v47, 4  ;;  %v4378_v30 = vrot.slane %v8168_v59, 5  ;;  %v2245_v61 = vshrl.u32 %v5084_v55, 16  ;;  %v3919_v63 = vrot.slane %v3917_v29, 5  ;;  %v5310_v29 = vld [vmem:[%s6353_s24 + $0xcc] sm:$0xf] }
 0x10c   : > { %v3927_v18 = vshrl.u32 %v7630_v58, 16  ;;  %v2248_v43 = vshll.u32 %v5084_v55, 16  ;;  %v5370_v37 = vrot.slane %v5354_v33, 9  ;;  %v3878_v9 = vsel %vm6379_vm4, %v7624_v12, %v7563_v42  ;;  %v7706_v55 = vld [vmem:[%s6353_s24 + $0xd0] sm:$0xf] }
 0x10d   : > { %5818 = vmatmul.mubr.msk.bf16.gmra.mrb[12].mxu0 %vm662_vm3, %v7561_v44  ;;  %v4375_v44 = vrot.slane %v8167_v23, 5  ;;  %v2247_v51 = vrot.slane %v2245_v61, 4  ;;  %v3896_v11 = vor.u32 %v7648_v62, %v7638_v21  ;;  %v4382_v47 = vrot.slane %v8171_v28, 5  ;;  %v6198_v21 = vld [vmem:[%s6353_s24 + $0x24] sm:$0xff]   ;;  %v6263_v27 = vld [vmem:[%s6353_s24 + $0xac] sm:$0xf] }
 0x10e   : > { %5664 = vmatmul.mubr.msk.bf16.gmra.mrb[28].mxu1 %vm662_vm3, %v4976_v56  ;;  %5821 = vmatprep.mubr.msk.bf16.mxu0 %vm662_vm3, %v7565_v41  ;;  %v8170_v56 = vld [vmem:[#allocation5_spill] sm:$0xff]  ;;  %v2250_v46 = vrot.slane %v2248_v43, 5  ;;  %v3888_v19 = vsel %vm6379_vm4, %v7646_v8, %v7575_v17  ;;  %v4385_v12 = vrot.slane %v7458_v2, 5  ;;  %v7714_v62 = vrot.slane %v3923_v50, 5  ;;  %v5355_v8 = vld [vmem:[%s6353_s24 + $0x90] sm:$0xe] }
 0x10f   : > { %5669 = vmatprep.mubr.msk.bf16.mxu1 %vm662_vm3, %v6196_v6  ;;  %v2267_v41 = vsel %vm6379_vm4, %v8170_v56, %v8169_v16  ;;  %v7688_v20 = vsel %vm6605_vm7, %v5369_v22, %v4375_v44  ;;  %v4377_v31 = vrot.slane %v4375_v44, 4  ;;  %v3906_v6 = vor.u32 %v7657_v52, %v7655_v4  ;;  %v7720_v52 = vld [vmem:[%s6353_s24 + $0xc8] sm:$0x1]  ;;  %v8173_v16 = vld [vmem:[#allocation2_spill] sm:$0xff] }
 0x110   : > { %v3929_v22 = vrot.slane %v3927_v18, 4  ;;  %v2251_v17 = vor.u32 %v2250_v46, %v2247_v51  ;;  %v3911_v23 = vrot.slane %v3909_v49, 5  ;;  %v3920_v44 = vor.u32 %v3919_v63, %v3916_v38  ;;  %v8174_v51 = vld [vmem:[#allocation3_spill] sm:$0xff] }
 0x111   : > { %v7710_v42 = vsel %vm6605_vm7, %v4377_v31, %v4378_v30  ;;  %v7724_v59 = vsel %vm6605_vm7, %v5370_v37, %v4382_v47  ;;  %v4384_v30 = vrot.slane %v4382_v47, 4  ;;  %v3938_v2 = vshrl.u32 %v5310_v29, 16 }
 0x112   : > { %v5385_v33 = vcombine.low %v7688_v20, %v7710_v42  ;;  %v3941_v50 = vshll.u32 %v5310_v29, 16  ;;  %v3947_v61 = vshll.u32 %v7706_v55, 16  ;;  %v2252_v18 = vrot.slane %v2251_v17, 4  ;;  %v6199_v29 = vld [vmem:[%s6353_s24 + $0x30] sm:$0xff]  }
 0x113   : > { %v3951_v49 = vshrl.u32 %v7706_v55, 16  ;;  %v7735_v38 = vsel %vm6605_vm7, %v4384_v30, %v4385_v12  ;;  %v5371_v63 = vrot.slane %v5355_v8, 9  ;;  %v3930_v56 = vor.u32 %v3929_v22, %v7714_v62 }
 0x114   : > { %v3933_v31 = vshll.u32 %v7720_v52, 16  ;;  %v5386_v37 = vcombine.low %v7724_v59, %v7735_v38  ;;  %v5325_v46 = vcombine.low %v3878_v9, %v3888_v19  ;;  %v3897_v28 = vrot.slane %v3896_v11, 4  ;;  %v5356_v11 = vld [vmem:[%s6353_s24 + $0x9c] sm:$0xe] }
 0x115   : > { %5822 = vmatmul.mubr.msk.bf16.gmra.mrb[16].mxu0 %vm662_vm3, %v7567_v5  ;;  %v8172_v5 = vld [vmem:[#allocation15_spill] sm:$0xff]  ;;  %v3907_v47 = vrot.slane %v3906_v6, 4  ;;  %v3921_v12 = vrot.slane %v3920_v44, 4  ;;  %v4392_v8 = vrot.slane %v7467_v3, 5  ;;  %v3940_v30 = vrot.slane %v3938_v2, 4  ;;  %v6200_v19 = vld [vmem:[%s6353_s24 + $0x3c] sm:$0xff]  }
 0x116   : > { %5670 = vmatmul.mubr.msk.bf16.vlgmr.msra.gmra.mrb[0].mxu1 %vm662_vm3, %v6197_v1  ;;  %5825 = vmatprep.mubr.msk.bf16.mxu0 %vm662_vm3, %v7569_v7  ;;  %v4389_v43 = vrot.slane %v8172_v5, 5  ;;  %v2257_v7 = vsel %vm6379_vm4, %v2252_v18, %v8174_v51  ;;  %v3943_v18 = vrot.slane %v3941_v50, 5  ;;  %v7758_v5 = vrot.slane %v3947_v61, 5 }
 0x117   : > { %5872 = vmatpush3.bf16.msra.mxu1 %v8173_v16  ;;  %5673 = vmatprep.mubr.msk.bf16.mxu1 %vm662_vm3, %v6198_v21  ;;  %v7747_v1 = vcombine.low %v2257_v7, %v2267_v41  ;;  %v7751_v21 = vld [vmem:[%s6353_s24 + $0xd4] sm:$0x1]  ;;  %v3953_v9 = vrot.slane %v3951_v49, 4  ;;  %v3931_v41 = vrot.slane %v3930_v56, 4  ;;  %v3935_v6 = vrot.slane %v3933_v31, 5 }
 0x118   : > { %v7755_v22 = vsel %vm6605_vm7, %v5371_v63, %v4389_v43  ;;  %v4391_v17 = vrot.slane %v4389_v43, 4  ;;  %v3902_v63 = vsel %vm6379_vm4, %v3897_v28, %v7655_v4  ;;  %v3912_v2 = vsel %vm6379_vm4, %v3907_v47, %v3911_v23  ;;  %v6250_v16 = vld [vmem:[%s6353_s24 + $0x1c] sm:$0xf]  ;;  %v5357_v28 = vld [vmem:[%s6353_s24 + $0xa8] sm:$0xe] }
 0x119   : > { %v3957_v50 = vshll.u32 %v7751_v21, 16  ;;  %v5372_v61 = vrot.slane %v5356_v11, 9  ;;  %v4396_v49 = vrot.slane %v7455_v25, 5  ;;  %v3926_v4 = vsel %vm6379_vm4, %v3921_v12, %v7714_v62  ;;  %v5345_v62 = vld [vmem:[%s6353_s24 + $0x18] sm:$0xe]  ;;  %v6201_v47 = vld [vmem:[%s6353_s24 + $0x48] sm:$0xff]  }
 0x11a   : > { %v7764_v44 = vsel %vm6605_vm7, %v4391_v17, %v4392_v8  ;;  %v3954_v43 = vor.u32 %v3953_v9, %v7758_v5  ;;  %v4399_v23 = vrot.slane %v7500_v57, 5  ;;  %v3936_v25 = vsel %vm6379_vm4, %v3931_v41, %v3935_v6  ;;  %v6251_v11 = vld [vmem:[%s6353_s24 + $0x20] sm:$0x1] }
 0x11b   : > { %v5387_v3 = vcombine.low %v7755_v22, %v7764_v44  ;;  %v4319_v56 = vrot.slane %v6250_v16, 5  ;;  %v7790_v31 = vsel %vm6605_vm7, %v5372_v61, %v4396_v49  ;;  %v4398_v51 = vrot.slane %v4396_v49, 4  ;;  %v5358_v49 = vld [vmem:[%s6353_s24 + $0xb4] sm:$0xe] }
 0x11c   : > { %v5326_v7 = vcombine.low %v3902_v63, %v3912_v2  ;;  %v3955_v17 = vrot.slane %v3954_v43, 4  ;;  %v5373_v41 = vrot.slane %v5357_v28, 9  ;;  %v4403_v6 = vrot.slane %v7503_v34, 5  ;;  %v5346_v2 = vld [vmem:[%s6353_s24 + $0x24] sm:$0xe] }
 0x11d   : > { %5826 = vmatmul.mubr.msk.bf16.gmra.mrb[20].mxu0 %vm662_vm3, %v7602_v24  ;;  %v3944_v24 = vor.u32 %v3943_v18, %v3940_v30  ;;  %v7795_v57 = vsel %vm6605_vm7, %v4398_v51, %v4399_v23  ;;  %v6202_v30 = vld [vmem:[%s6353_s24 + $0x54] sm:$0xff]   ;;  %v5361_v18 = vrot.slane %v5345_v62, 9  ;;  %v4321_v9 = vrot.slane %v4319_v56, 4  ;;  %v6254_v28 = vld [vmem:[%s6353_s24 + $0x2c] sm:$0x1] }
 0x11e   : > { %5674 = vmatmul.mubr.msk.bf16.gmra.mrb[4].mxu1 %vm662_vm3, %v6199_v29  ;;  %5829 = vmatprep.mubr.msk.bf16.mxu0 %vm662_vm3, %v5325_v46  ;;  %v3959_v46 = vrot.slane %v3957_v50, 5  ;;  %v5327_v29 = vcombine.low %v3926_v4, %v3936_v25  ;;  %v5388_v8 = vcombine.low %v7790_v31, %v7795_v57  ;;  %v4406_v63 = vrot.slane %v7513_v48, 5  ;;  %v6252_v50 = vld [vmem:[%s6353_s24 + $0x28] sm:$0xf]  ;;  %v5347_v25 = vld [vmem:[%s6353_s24 + $0x30] sm:$0xe] }
 0x11f   : > { %5677 = vmatprep.mubr.msk.bf16.mxu1 %vm662_vm3, %v6200_v19  ;;  %v3945_v12 = vrot.slane %v3944_v24, 4  ;;  %v4322_v19 = vrot.slane %v6251_v11, 5  ;;  %v4326_v61 = vrot.slane %v6252_v50, 5  ;;  %v7818_v48 = vsel %vm6605_vm7, %v5373_v41, %v4403_v6  ;;  %v6204_v11 = vld [vmem:[%s6353_s24 + $0x6c] sm:$0xff]   ;;  %v8175_v41 = vld [vmem:[#allocation6_spill] sm:$0xff] }
 0x120   : > { %v3960_v34 = vsel %vm6379_vm4, %v3955_v17, %v3959_v46  ;;  %v4405_v24 = vrot.slane %v4403_v6, 4  ;;  %v4320_v43 = vsel %vm6605_vm7, %v5361_v18, %v4319_v56  ;;  %v5362_v51 = vrot.slane %v5346_v2, 9  ;;  %v5359_v50 = vld [vmem:[%s6353_s24 + $0xc0] sm:$0xe]  ;;  %v6268_v31 = vld [vmem:[%s6353_s24 + $0xc8] sm:$0x1] }
 0x121   : > { %v3950_v4 = vsel %vm6379_vm4, %v3945_v12, %v7758_v5  ;;  %v4323_v23 = vsel %vm6605_vm7, %v4321_v9, %v4322_v19  ;;  %v6253_v5 = vld [vmem:[%s6353_s24 + $0x34] sm:$0xf]  ;;  %v6203_v12 = vld [vmem:[%s6353_s24 + $0x60] sm:$0xff]   ;;  %v5363_v18 = vrot.slane %v5347_v25, 9  ;;  %v4413_v9 = vrot.slane %v7627_v35, 5 }
 0x122   : > { %v4333_v16 = vrot.slane %v6253_v5, 5  ;;  %v7829_v62 = vsel %vm6605_vm7, %v4405_v24, %v4406_v63  ;;  %v5328_v46 = vcombine.low %v3950_v4, %v3960_v34  ;;  %v5377_v17 = vcombine.low %v4320_v43, %v4323_v23  ;;  %v5348_v24 = vld [vmem:[%s6353_s24 + $0x3c] sm:$0xe] }
 0x123   : > { %v5389_v56 = vcombine.low %v7818_v48, %v7829_v62  ;;  %v4336_v6 = vrot.slane %v8175_v41, 5  ;;  %v4327_v35 = vsel %vm6605_vm7, %v5362_v51, %v4326_v61  ;;  %v5375_v5 = vrot.slane %v5359_v50, 9 }
 0x124   : > { %v4335_v19 = vrot.slane %v4333_v16, 4  ;;  %v4334_v23 = vsel %vm6605_vm7, %v5363_v18, %v4333_v16  ;;  %v4420_v51 = vrot.slane %v7720_v52, 5  ;;  %v2408_v57 = vshll.u32 %v6268_v31, 16 }
 0x125   : > { %5830 = vmatmul.mubr.msk.bf16.gmra.mrb[24].mxu0 %vm662_vm3, %v5326_v7  ;;  %v5374_v7 = vrot.slane %v5358_v49, 9 }
 0x126   : > { %5678 = vmatmul.mubr.msk.bf16.gmra.mrb[8].mxu1 %vm662_vm3, %v6201_v47  ;;  %5833 = vmatprep.mubr.msk.bf16.mxu0 %vm662_vm3, %v5327_v29  ;;  %v4329_v47 = vrot.slane %v6254_v28, 5  ;;  %v4410_v29 = vrot.slane %v7578_v39, 5  ;;  %v8176_v39 = vld [vmem:[#allocation7_spill] sm:$0xff]  ;;  %v4337_v25 = vsel %vm6605_vm7, %v4335_v19, %v4336_v6  ;;  %v5364_v28 = vrot.slane %v5348_v24, 9 }
 0x127   : > { %5681 = vmatprep.mubr.msk.bf16.mxu1 %vm662_vm3, %v6202_v30  ;;  %v4328_v30 = vrot.slane %v4326_v61, 4  ;;  %v4340_v49 = vrot.slane %v8176_v39, 5  ;;  %v4417_v61 = vrot.slane %v7630_v58, 5  ;;  %v6255_v39 = vld [vmem:[%s6353_s24 + $0x70] sm:$0xf]  ;;  %v4424_v24 = vrot.slane %v7706_v55, 5 }
 0x128   : > { %v7841_v63 = vsel %vm6605_vm7, %v5374_v7, %v4410_v29  ;;  %v4412_v2 = vrot.slane %v4410_v29, 4  ;;  %v5081_v7 = vld [vmem:[%s6353_s24 + $0x6c] sm:$0xf]  ;;  %v8177_v29 = vld [vmem:[#allocation8_spill] sm:$0xff] }
 0x129   : > { %v4330_v34 = vsel %vm6605_vm7, %v4328_v30, %v4329_v47  ;;  %v4342_v47 = vrot.slane %v4340_v49, 4  ;;  %v6205_v30 = vld [vmem:[%s6353_s24 + $0x78] sm:$0xff]   ;;  %v7872_v16 = vsel %vm6605_vm7, %v5375_v5, %v4417_v61  ;;  %v4419_v18 = vrot.slane %v4417_v61, 4 }
 0x12a   : > { %v7848_v4 = vsel %vm6605_vm7, %v4412_v2, %v4413_v9  ;;  %v5379_v9 = vcombine.low %v4334_v23, %v4337_v25  ;;  %v2221_v19 = vshrl.u32 %v5081_v7, 16  ;;  %v2224_v41 = vshll.u32 %v5081_v7, 16 }
 0x12b   : > { %v5390_v43 = vcombine.low %v7841_v63, %v7848_v4  ;;  %v7877_v58 = vsel %vm6605_vm7, %v4419_v18, %v4420_v51  ;;  %v4341_v6 = vsel %vm6605_vm7, %v5364_v28, %v4340_v49  ;;  %v4427_v49 = vrot.slane %v7751_v21, 5  ;;  %v6207_v51 = vld [vmem:[%s6353_s24 + $0x90] sm:$0xff]   ;;  %v6208_v21 = vld [vmem:[%s6353_s24 + $0x9c] sm:$0xff]  }
 0x12c   : > { %v5391_v50 = vcombine.low %v7872_v16, %v7877_v58  ;;  %v2223_v23 = vrot.slane %v2221_v19, 4  ;;  %v2226_v25 = vrot.slane %v2224_v41, 5  ;;  %v4426_v7 = vrot.slane %v4424_v24, 4 }
 0x12d   : > { %5834 = vmatmul.mubr.msk.bf16.gmra.mrb[28].mxu0 %vm662_vm3, %v5328_v46  ;;  %v5378_v46 = vcombine.low %v4327_v35, %v4330_v34  ;;  %v2230_v35 = vshll.u32 %v6255_v39, 16  ;;  %v2234_v34 = vshrl.u32 %v6255_v39, 16 }
 0x12e   : > { %5682 = vmatmul.mubr.msk.bf16.gmra.mrb[12].mxu1 %vm662_vm3, %v6203_v12  ;;  %5839 = vmatprep.mubr.msk.bf16.mxu0 %vm662_vm3, %v5377_v17  ;;  %v4343_v12 = vrot.slane %v8177_v29, 5  ;;  %v5360_v17 = vld [vmem:[%s6353_s24 + $0xcc] sm:$0xe]  ;;  %v7899_v55 = vsel %vm6605_vm7, %v4426_v7, %v4427_v49 }
 0x12f   : > { %5685 = vmatprep.mubr.msk.bf16.mxu1 %vm662_vm3, %v6204_v11  ;;  %v6206_v11 = vld [vmem:[%s6353_s24 + $0x84] sm:$0xff]   ;;  %v5376_v52 = vrot.slane %v5360_v17, 9  ;;  %v2236_v28 = vrot.slane %v2234_v34, 4  ;;  %v6256_v17 = vld [vmem:[%s6353_s24 + $0x74] sm:$0x1] }
 0x130   : > { %v4344_v2 = vsel %vm6605_vm7, %v4342_v47, %v4343_v12  ;;  %v5087_v47 = vld [vmem:[%s6353_s24 + $0x84] sm:$0xf]  ;;  %v2227_v12 = vor.u32 %v2226_v25, %v2223_v23  ;;  %v6210_v34 = vld [vmem:[%s6353_s24 + $0xb4] sm:$0xff]  }
 0x131   : > { %v7894_v5 = vsel %vm6605_vm7, %v5376_v52, %v4424_v24  ;;  %v5380_v61 = vcombine.low %v4341_v6, %v4344_v2  ;;  %v2272_v18 = vshll.u32 %v5087_v47, 16  ;;  %v5090_v6 = vld [vmem:[%s6353_s24 + $0x90] sm:$0xf]  ;;  %v6209_v2 = vld [vmem:[%s6353_s24 + $0xa8] sm:$0xff]  }
 0x132   : > { %v5392_v29 = vcombine.low %v7894_v5, %v7899_v55  ;;  %v2228_v52 = vrot.slane %v2227_v12, 4  ;;  %v2293_v23 = vshrl.u32 %v5090_v6, 16  ;;  %v2296_v25 = vshll.u32 %v5090_v6, 16 }
 0x133   : > { %v2326_v12 = vshll.u32 %v6259_v60, 16 }
 0x134   : > { %v2298_v14 = vrot.slane %v2296_v25, 5  ;;  %v6262_v25 = vld [vmem:[%s6353_s24 + $0xa4] sm:$0x1] }
 0x135   : > { %5840 = vmatmul.mubr.msk.bf16.vlgmr.msra.gmra.mrb[0].mxu0 %vm662_vm3, %v5378_v46  ;;  %v2232_v46 = vrot.slane %v2230_v35, 5  ;;  %v5093_v35 = vld [vmem:[%s6353_s24 + $0x9c] sm:$0xf]  ;;  %v7941_v6 = vrot.slane %v2326_v12, 5 }
 0x136   : > { %5686 = vmatmul.mubr.msk.bf16.gmra.mrb[16].mxu1 %vm662_vm3, %v6205_v30  ;;  %5843 = vmatprep.mubr.msk.bf16.mxu0 %vm662_vm3, %v5379_v9  ;;  %v2240_v30 = vshll.u32 %v6256_v17, 16  ;;  %v2269_v9 = vshrl.u32 %v5087_v47, 16  ;;  %v2320_v47 = vshll.u32 %v5093_v35, 16  ;;  %v6260_v17 = vld [vmem:[%s6353_s24 + $0x8c] sm:$0x1] }
 0x137   : > { %5689 = vmatprep.mubr.msk.bf16.mxu1 %vm662_vm3, %v6206_v11  ;;  %v2237_v13 = vor.u32 %v2236_v28, %v2232_v46  ;;  %v6257_v11 = vld [vmem:[%s6353_s24 + $0x88] sm:$0xf]  ;;  %v2233_v7 = vsel %vm6379_vm4, %v2228_v52, %v2232_v46 }
 0x138   : > { %v2278_v19 = vshll.u32 %v6257_v11, 16  ;;  %v2282_v41 = vshrl.u32 %v6257_v11, 16  ;;  %v2242_v0 = vrot.slane %v2240_v30, 5  ;;  %v2271_v36 = vrot.slane %v2269_v9, 4 }
 0x139   : > { %v2238_v39 = vrot.slane %v2237_v13, 4  ;;  %v2288_v30 = vshll.u32 %v6260_v17, 16  ;;  %v2295_v9 = vrot.slane %v2293_v23, 4  ;;  %v2322_v11 = vrot.slane %v2320_v47, 5 }
 0x13a   : > { %v7918_v24 = vrot.slane %v2278_v19, 5  ;;  %v2284_v49 = vrot.slane %v2282_v41, 4  ;;  %v6211_v19 = vld [vmem:[%s6353_s24 + $0xc0] sm:$0xff]  }
 0x13b   : > { %v2243_v46 = vsel %vm6379_vm4, %v2238_v39, %v2242_v0  ;;  %v5096_v39 = vld [vmem:[%s6353_s24 + $0xa8] sm:$0xf] }
 0x13c   : > { %v2285_v13 = vor.u32 %v2284_v49, %v7918_v24  ;;  %v5113_v41 = vcombine.low %v2233_v7, %v2243_v46  ;;  %v2336_v7 = vshll.u32 %v6262_v25, 16  ;;  %v2344_v45 = vshll.u32 %v5096_v39, 16 }
 0x13d   : > { %5844 = vmatmul.mubr.msk.bf16.gmra.mrb[4].mxu0 %vm662_vm3, %v5380_v61  ;;  %v6258_v61 = vld [vmem:[%s6353_s24 + $0x94] sm:$0xf] }
 0x13e   : > { %5690 = vmatmul.mubr.msk.bf16.gmra.mrb[20].mxu1 %vm662_vm3, %v6207_v51  ;;  %5847 = vmatprep.mubr.msk.bf16.mxu0 %vm662_vm3, %v5381_v10  ;;  %v2274_v10 = vrot.slane %v2272_v18, 5  ;;  %v2302_v51 = vshll.u32 %v6258_v61, 16  ;;  %v2306_v28 = vshrl.u32 %v6258_v61, 16  ;;  %v2286_v0 = vrot.slane %v2285_v13, 4 }
 0x13f   : > { %5693 = vmatprep.mubr.msk.bf16.mxu1 %vm662_vm3, %v6208_v21  ;;  %v2317_v21 = vshrl.u32 %v5093_v35, 16  ;;  %v6261_v35 = vld [vmem:[%s6353_s24 + $0x98] sm:$0x1]  ;;  %v2341_v61 = vshrl.u32 %v5096_v39, 16  ;;  %v5102_v39 = vld [vmem:[%s6353_s24 + $0xc0] sm:$0xf] }
 0x140   : > { %v2275_v15 = vor.u32 %v2274_v10, %v2271_v36  ;;  %v7938_v26 = vrot.slane %v2302_v51, 5  ;;  %v2290_v36 = vrot.slane %v2288_v30, 5  ;;  %v2299_v10 = vor.u32 %v2298_v14, %v2295_v9  ;;  %v5099_v51 = vld [vmem:[%s6353_s24 + $0xb4] sm:$0xf] }
 0x141   : > { %v2319_v18 = vrot.slane %v2317_v21, 4  ;;  %v2354_v21 = vshrl.u32 %v6263_v27, 16  ;;  %v2365_v20 = vshrl.u32 %v5099_v51, 16  ;;  %v2368_v42 = vshll.u32 %v5099_v51, 16 }
 0x142   : > { %v2276_v52 = vrot.slane %v2275_v15, 4  ;;  %v2291_v46 = vsel %vm6379_vm4, %v2286_v0, %v2290_v36  ;;  %v2300_v15 = vrot.slane %v2299_v10, 4  ;;  %v2338_v30 = vrot.slane %v2336_v7, 5 }
 0x143   : > { %v2323_v23 = vor.u32 %v2322_v11, %v2319_v18  ;;  %v2343_v9 = vrot.slane %v2341_v61, 4  ;;  %v2356_v11 = vrot.slane %v2354_v21, 4  ;;  %v6267_v61 = vld [vmem:[%s6353_s24 + $0xbc] sm:$0x1] }
 0x144   : > { %v2281_v47 = vsel %vm6379_vm4, %v2276_v52, %v7918_v24  ;;  %v2305_v0 = vsel %vm6379_vm4, %v2300_v15, %v7938_v26  ;;  %v2384_v22 = vshll.u32 %v6267_v61, 16 }
 0x145   : > { %5848 = vmatmul.mubr.msk.bf16.gmra.mrb[8].mxu0 %vm662_vm3, %v5382_v40  ;;  %v2330_v40 = vshrl.u32 %v6259_v60, 16  ;;  %v2324_v17 = vrot.slane %v2323_v23, 4  ;;  %v5115_v24 = vcombine.low %v2281_v47, %v2291_v46 }
 0x146   : > { %5694 = vmatmul.mubr.msk.bf16.gmra.mrb[24].mxu1 %vm662_vm3, %v6209_v2  ;;  %5851 = vmatprep.mubr.msk.bf16.mxu0 %vm662_vm3, %v5383_v54  ;;  %v2308_v54 = vrot.slane %v2306_v28, 4 }
 0x147   : > { %5697 = vmatprep.mubr.msk.bf16.mxu1 %vm662_vm3, %v6210_v34  ;;  %v2332_v2 = vrot.slane %v2330_v40, 4  ;;  %v2312_v34 = vshll.u32 %v6261_v35, 16  ;;  %v2329_v10 = vsel %vm6379_vm4, %v2324_v17, %v7941_v6  ;;  %v2410_v17 = vrot.slane %v2408_v57, 5 }
 0x148   : > { %v2309_v49 = vor.u32 %v2308_v54, %v7938_v26  ;;  %v2346_v54 = vrot.slane %v2344_v45, 5  ;;  %v6265_v26 = vld [vmem:[%s6353_s24 + $0xb0] sm:$0x1] }
 0x149   : > { %v2333_v28 = vor.u32 %v2332_v2, %v7941_v6  ;;  %v2314_v60 = vrot.slane %v2312_v34, 5  ;;  %v2360_v35 = vshll.u32 %v6265_v26, 16  ;;  %v2389_v34 = vshrl.u32 %v5102_v39, 16 }
 0x14a   : > { %v2310_v13 = vrot.slane %v2309_v49, 4  ;;  %v2347_v38 = vor.u32 %v2346_v54, %v2343_v9  ;;  %v2392_v6 = vshll.u32 %v5102_v39, 16  ;;  %v6266_v49 = vld [vmem:[%s6353_s24 + $0xc4] sm:$0xf] }
 0x14b   : > { %v2334_v14 = vrot.slane %v2333_v28, 4  ;;  %v2398_v23 = vshll.u32 %v6266_v49, 16  ;;  %v2402_v25 = vshrl.u32 %v6266_v49, 16  ;;  %v2362_v45 = vrot.slane %v2360_v35, 5 }
 0x14c   : > { %v2315_v36 = vsel %vm6379_vm4, %v2310_v13, %v2314_v60  ;;  %v2348_v51 = vrot.slane %v2347_v38, 4  ;;  %v2386_v60 = vrot.slane %v2384_v22, 5 }
 0x14d   : > { %5852 = vmatmul.mubr.msk.bf16.gmra.mrb[12].mxu0 %vm662_vm3, %v5384_v53  ;;  %v2350_v53 = vshll.u32 %v6263_v27, 16  ;;  %v2339_v59 = vsel %vm6379_vm4, %v2334_v14, %v2338_v30  ;;  %v5116_v44 = vcombine.low %v2305_v0, %v2315_v36  ;;  %v2391_v27 = vrot.slane %v2389_v34, 4 }
 0x14e   : > { %5698 = vmatmul.mubr.msk.bf16.gmra.mrb[28].mxu1 %vm662_vm3, %v6211_v19  ;;  %5855 = vmatprep.mubr.msk.bf16.mxu0 %vm662_vm3, %v5385_v33  ;;  %v6264_v33 = vld [vmem:[%s6353_s24 + $0xb8] sm:$0xf]  ;;  %v2367_v19 = vrot.slane %v2365_v20, 4  ;;  %v2400_v21 = vrot.slane %v2398_v23, 5  ;;  %v2404_v47 = vrot.slane %v2402_v25, 4 }
 0x14f   : > { %5719 = vmatprep.mubr.msk.bf16.mxu1 %vm662_vm3, %v5113_v41  ;;  %v2374_v12 = vshll.u32 %v6264_v33, 16  ;;  %v2378_v40 = vshrl.u32 %v6264_v33, 16  ;;  %v2352_v18 = vrot.slane %v2350_v53, 5  ;;  %v2370_v41 = vrot.slane %v2368_v42, 5 }
 0x150   : > { %v2394_v53 = vrot.slane %v2392_v6, 5 }
 0x151   : > { %v2376_v52 = vrot.slane %v2374_v12, 5  ;;  %v2380_v2 = vrot.slane %v2378_v40, 4  ;;  %v2353_v20 = vsel %vm6379_vm4, %v2348_v51, %v2352_v18  ;;  %v2405_v12 = vor.u32 %v2404_v47, %v2400_v21 }
 0x152   : > { %v2395_v33 = vor.u32 %v2394_v53, %v2391_v27 }
 0x153   : > { %v2381_v7 = vor.u32 %v2380_v2, %v2376_v52  ;;  %v2406_v13 = vrot.slane %v2405_v12, 4 }
 0x154   : > { %v2396_v40 = vrot.slane %v2395_v33, 4 }
 0x155   : > { %5856 = vmatmul.mubr.msk.bf16.gmra.mrb[16].mxu0 %vm662_vm3, %v5386_v37  ;;  %v2357_v37 = vor.u32 %v2356_v11, %v2352_v18  ;;  %v2382_v15 = vrot.slane %v2381_v7, 4  ;;  %v2411_v9 = vsel %vm6379_vm4, %v2406_v13, %v2410_v17 }
 0x156   : > { %5720 = vmatmul.mubr.msk.bf16.vlgmr.msra.gmra.mrb[16].mxu1 %vm662_vm3, %v7747_v1  ;;  %5859 = vmatprep.mubr.msk.bf16.mxu0 %vm662_vm3, %v5387_v3  ;;  %v2371_v1 = vor.u32 %v2370_v41, %v2367_v19  ;;  %v5117_v3 = vcombine.low %v2329_v10, %v2339_v59  ;;  %v2401_v30 = vsel %vm6379_vm4, %v2396_v40, %v2400_v21 }
 0x157   : > { %5723 = vmatprep.mubr.msk.bf16.mxu1 %vm662_vm3, %v5115_v24  ;;  %v2358_v28 = vrot.slane %v2357_v37, 4  ;;  %v2387_v48 = vsel %vm6379_vm4, %v2382_v15, %v2386_v60  ;;  %v5120_v14 = vcombine.low %v2401_v30, %v2411_v9 }
 0x158   : > { %v2372_v46 = vrot.slane %v2371_v1, 4 }
 0x159   : > { %v2363_v42 = vsel %vm6379_vm4, %v2358_v28, %v2362_v45 }
 0x15a   : > { %v5118_v62 = vcombine.low %v2353_v20, %v2363_v42 }
 0x15d   : > { %5860 = vmatmul.mubr.msk.bf16.gmra.mrb[20].mxu0 %vm662_vm3, %v5388_v8  ;;  %v2377_v8 = vsel %vm6379_vm4, %v2372_v46, %v2376_v52 }
 0x15e   : > { %5724 = vmatmul.mubr.msk.bf16.gmra.mrb[20].mxu1 %vm662_vm3, %v5116_v44  ;;  %5863 = vmatprep.mubr.msk.bf16.mxu0 %vm662_vm3, %v5389_v56  ;;  %v5119_v56 = vcombine.low %v2377_v8, %v2387_v48 }
 0x15f   : > { %5727 = vmatprep.mubr.msk.bf16.mxu1 %vm662_vm3, %v5117_v3 }
 0x165   : > { %5864 = vmatmul.mubr.msk.bf16.gmra.mrb[24].mxu0 %vm662_vm3, %v5390_v43 }
 0x166   : > { %5728 = vmatmul.mubr.msk.bf16.gmra.mrb[24].mxu1 %vm662_vm3, %v5118_v62  ;;  %5867 = vmatprep.mubr.msk.bf16.mxu0 %vm662_vm3, %v5391_v50 }
 0x167   : > { %5731 = vmatprep.mubr.msk.bf16.mxu1 %vm662_vm3, %v5119_v56 }
 0x16d   : > { %5868 = vmatmul.mubr.msk.bf16.gmra.mrb[28].mxu0 %vm662_vm3, %v5392_v29 }
 0x16e   : > { %5732 = vmatmul.mubr.msk.bf16.gmra.mrb[28].mxu1 %vm662_vm3, %v5120_v14 }
 0x1e9   : > { %v5671_v63 = vpop.f32.mrb[0].mxu1 }
 0x1ea   : > { %v1821_v4 = vpop.f32.mrb[1].mxu1 }
 0x1eb   : > { %v5672_v43 = vpop.f32.mrb[2].mxu1 }
 0x1ec   : > { %v1824_v16 = vpop.f32.mrb[3].mxu1 }
 0x1f1   : > { %v5675_v58 = vpop.f32.mrb[4].mxu1 }
 0x1f2   : > { %v1837_v50 = vpop.f32.mrb[5].mxu1 }
 0x1f3   : > { %v5676_v54 = vpop.f32.mrb[6].mxu1 }
 0x1f4   : > { %v1840_v18 = vpop.f32.mrb[7].mxu1 }
 0x1f9   : > { %v5679_v11 = vpop.f32.mrb[8].mxu1 }
 0x1fa   : > { %v1853_v32 = vpop.f32.mrb[9].mxu1 }
 0x1fb   : > { %v5680_v24 = vpop.f32.mrb[10].mxu1 }
 0x1fc   : > { %v1856_v19 = vpop.f32.mrb[11].mxu1 }
 0x201   : > { %v5683_v41 = vpop.f32.mrb[12].mxu1 }
 0x202   : > { %v1869_v52 = vpop.f32.mrb[13].mxu1 }
 0x203   : > { %v5684_v5 = vpop.f32.mrb[14].mxu1 }
 0x204   : > { %v1872_v55 = vpop.f32.mrb[15].mxu1 }
 0x208   : > { %v5841_v29 = vpop.f32.mrb[0].mxu0 }
 0x209   : > { %v5873_v2 = vadd.f32 %v5841_v29, %v5671_v63  ;;  %v4562_v39 = vpop.f32.mrb[1].mxu0 }
 0x20a   : > { %v5874_v0 = vadd.f32 %v4562_v39, %v1821_v4  ;;  %v5842_v36 = vpop.f32.mrb[2].mxu0 }
 0x20b   : > { %v4723_v10 = vmax.f32 %v5873_v2, 0.0  ;;  %v5875_v59 = vadd.f32 %v5842_v36, %v5672_v43  ;;  %v4565_v38 = vpop.f32.mrb[3].mxu0 }
 0x20c   : > { %v4721_v37 = vmax.f32 %v5874_v0, 0.0  ;;  %v5876_v26 = vadd.f32 %v4565_v38, %v1824_v16 }
 0x20d   : > { %4756 = vst.msk [vmem:[%s8033_s18 + $0x10] sm:$0xff] %vm4753_vm8, %v4723_v10  ;;  %v4724_v35 = vmax.f32 %v5875_v59, 0.0 }
 0x20e   : > { %4754 = vst.msk [vmem:[%s8033_s18] sm:$0xff] %vm4753_vm8, %v4721_v37  ;;  %v4722_v34 = vmax.f32 %v5876_v26, 0.0 }
 0x20f   : > { %4757 = vst.msk [vmem:[%s8033_s18 + $0x18] sm:$0xff] %vm4753_vm8, %v4724_v35 }
 0x210   : > { %4755 = vst.msk [vmem:[%s8033_s18 + $0x8] sm:$0xff] %vm4753_vm8, %v4722_v34  ;;  %v5845_v6 = vpop.f32.mrb[4].mxu0 }
 0x211   : > { %v5877_v49 = vadd.f32 %v5845_v6, %v5675_v58  ;;  %v4578_v23 = vpop.f32.mrb[5].mxu0 }
 0x212   : > { %v5878_v25 = vadd.f32 %v4578_v23, %v1837_v50  ;;  %v5846_v1 = vpop.f32.mrb[6].mxu0 }
 0x213   : > { %v4727_v7 = vmax.f32 %v5877_v49, 0.0  ;;  %v5879_v61 = vadd.f32 %v5846_v1, %v5676_v54  ;;  %v4581_v22 = vpop.f32.mrb[7].mxu0 }
 0x214   : > { %v4725_v44 = vmax.f32 %v5878_v25, 0.0  ;;  %v5880_v3 = vadd.f32 %v4581_v22, %v1840_v18 }
 0x215   : > { %4760 = vst.msk [vmem:[%s8033_s18 + $0x30] sm:$0xff] %vm4753_vm8, %v4727_v7  ;;  %v4728_v51 = vmax.f32 %v5879_v61, 0.0 }
 0x216   : > { %4758 = vst.msk [vmem:[%s8033_s18 + $0x20] sm:$0xff] %vm4753_vm8, %v4725_v44  ;;  %v4726_v28 = vmax.f32 %v5880_v3, 0.0 }
 0x217   : > { %4761 = vst.msk [vmem:[%s8033_s18 + $0x38] sm:$0xff] %vm4753_vm8, %v4728_v51 }
 0x218   : > { %4759 = vst.msk [vmem:[%s8033_s18 + $0x28] sm:$0xff] %vm4753_vm8, %v4726_v28  ;;  %v5849_v45 = vpop.f32.mrb[8].mxu0 }
 0x219   : > { %v5881_v27 = vadd.f32 %v5849_v45, %v5679_v11  ;;  %v4594_v53 = vpop.f32.mrb[9].mxu0 }
 0x21a   : > { %v5882_v21 = vadd.f32 %v4594_v53, %v1853_v32  ;;  %v5850_v47 = vpop.f32.mrb[10].mxu0 }
 0x21b   : > { %v4731_v46 = vmax.f32 %v5881_v27, 0.0  ;;  %v5883_v15 = vadd.f32 %v5850_v47, %v5680_v24  ;;  %v4597_v60 = vpop.f32.mrb[11].mxu0 }
 0x21c   : > { %v4729_v20 = vmax.f32 %v5882_v21, 0.0  ;;  %v5884_v42 = vadd.f32 %v4597_v60, %v1856_v19 }
 0x21d   : > { %4764 = vst.msk [vmem:[%s8033_s18 + $0x50] sm:$0xff] %vm4753_vm8, %v4731_v46  ;;  %v4732_v33 = vmax.f32 %v5883_v15, 0.0 }
 0x21e   : > { %4762 = vst.msk [vmem:[%s8033_s18 + $0x40] sm:$0xff] %vm4753_vm8, %v4729_v20  ;;  %v4730_v12 = vmax.f32 %v5884_v42, 0.0 }
 0x21f   : > { %4765 = vst.msk [vmem:[%s8033_s18 + $0x58] sm:$0xff] %vm4753_vm8, %v4732_v33 }
 0x220   : > { %4763 = vst.msk [vmem:[%s8033_s18 + $0x48] sm:$0xff] %vm4753_vm8, %v4730_v12  ;;  %v5853_v31 = vpop.f32.mrb[12].mxu0 }
 0x221   : > { %v5885_v57 = vadd.f32 %v5853_v31, %v5683_v41  ;;  %v4610_v8 = vpop.f32.mrb[13].mxu0 }
 0x222   : > { %v5886_v48 = vadd.f32 %v4610_v8, %v1869_v52  ;;  %v5854_v62 = vpop.f32.mrb[14].mxu0 }
 0x223   : > { %v4735_v56 = vmax.f32 %v5885_v57, 0.0  ;;  %v5887_v40 = vadd.f32 %v5854_v62, %v5684_v5  ;;  %v4613_v13 = vpop.f32.mrb[15].mxu0 }
 0x224   : > { %v4733_v17 = vmax.f32 %v5886_v48, 0.0  ;;  %v5888_v30 = vadd.f32 %v4613_v13, %v1872_v55 }
 0x225   : > { %4768 = vst.msk [vmem:[%s8033_s18 + $0x70] sm:$0xff] %vm4753_vm8, %v4735_v56  ;;  %v4736_v9 = vmax.f32 %v5887_v40, 0.0 }
 0x226   : > { %4766 = vst.msk [vmem:[%s8033_s18 + $0x60] sm:$0xff] %vm4753_vm8, %v4733_v17  ;;  %v4734_v14 = vmax.f32 %v5888_v30, 0.0 }
 0x227   : > { %4769 = vst.msk [vmem:[%s8033_s18 + $0x78] sm:$0xff] %vm4753_vm8, %v4736_v9 }
 0x228   : > { %4767 = vst.msk [vmem:[%s8033_s18 + $0x68] sm:$0xff] %vm4753_vm8, %v4734_v14  ;;  %v5857_v63 = vpop.f32.mrb[16].mxu0 }
 0x229   : > { %v5721_v4 = vpop.f32.mrb[16].mxu1  ;;  %v4626_v43 = vpop.f32.mrb[17].mxu0 }
 0x22a   : > { %v5889_v16 = vadd.f32 %v5857_v63, %v5721_v4  ;;  %v2609_v58 = vpop.f32.mrb[17].mxu1  ;;  %v5858_v50 = vpop.f32.mrb[18].mxu0 }
 0x22b   : > { %v5890_v54 = vadd.f32 %v4626_v43, %v2609_v58  ;;  %v5722_v18 = vpop.f32.mrb[18].mxu1  ;;  %v4629_v11 = vpop.f32.mrb[19].mxu0 }
 0x22c   : > { %v4739_v32 = vmax.f32 %v5889_v16, 0.0  ;;  %v5891_v24 = vadd.f32 %v5858_v50, %v5722_v18  ;;  %v2612_v19 = vpop.f32.mrb[19].mxu1 }
 0x22d   : > { %v4737_v41 = vmax.f32 %v5890_v54, 0.0  ;;  %v5892_v52 = vadd.f32 %v4629_v11, %v2612_v19 }
 0x22e   : > { %4772 = vst.msk [vmem:[%s8033_s18 + $0x90] sm:$0xff] %vm4753_vm8, %v4739_v32  ;;  %v4740_v5 = vmax.f32 %v5891_v24, 0.0 }
 0x22f   : > { %4770 = vst.msk [vmem:[%s8033_s18 + $0x80] sm:$0xff] %vm4753_vm8, %v4737_v41  ;;  %v4738_v55 = vmax.f32 %v5892_v52, 0.0 }
 0x230   : > { %4773 = vst.msk [vmem:[%s8033_s18 + $0x98] sm:$0xff] %vm4753_vm8, %v4740_v5  ;;  %v5861_v29 = vpop.f32.mrb[20].mxu0 }
 0x231   : > { %4771 = vst.msk [vmem:[%s8033_s18 + $0x88] sm:$0xff] %vm4753_vm8, %v4738_v55  ;;  %v5725_v2 = vpop.f32.mrb[20].mxu1  ;;  %v4642_v39 = vpop.f32.mrb[21].mxu0 }
 0x232   : > { %v5893_v0 = vadd.f32 %v5861_v29, %v5725_v2  ;;  %v2625_v36 = vpop.f32.mrb[21].mxu1  ;;  %v5862_v10 = vpop.f32.mrb[22].mxu0 }
 0x233   : > { %v5894_v59 = vadd.f32 %v4642_v39, %v2625_v36  ;;  %v5726_v38 = vpop.f32.mrb[22].mxu1  ;;  %v4645_v37 = vpop.f32.mrb[23].mxu0 }
 0x234   : > { %v4743_v26 = vmax.f32 %v5893_v0, 0.0  ;;  %v5895_v35 = vadd.f32 %v5862_v10, %v5726_v38  ;;  %v2628_v34 = vpop.f32.mrb[23].mxu1 }
 0x235   : > { %v4741_v6 = vmax.f32 %v5894_v59, 0.0  ;;  %v5896_v49 = vadd.f32 %v4645_v37, %v2628_v34 }
 0x236   : > { %4776 = vst.msk [vmem:[%s8033_s18 + $0xb0] sm:$0xff] %vm4753_vm8, %v4743_v26  ;;  %v4744_v23 = vmax.f32 %v5895_v35, 0.0 }
 0x237   : > { %4774 = vst.msk [vmem:[%s8033_s18 + $0xa0] sm:$0xff] %vm4753_vm8, %v4741_v6  ;;  %v4742_v25 = vmax.f32 %v5896_v49, 0.0 }
 0x238   : > { %4777 = vst.msk [vmem:[%s8033_s18 + $0xb8] sm:$0xff] %vm4753_vm8, %v4744_v23  ;;  %v5865_v1 = vpop.f32.mrb[24].mxu0 }
 0x239   : > { %4775 = vst.msk [vmem:[%s8033_s18 + $0xa8] sm:$0xff] %vm4753_vm8, %v4742_v25  ;;  %v5729_v7 = vpop.f32.mrb[24].mxu1  ;;  %v4658_v61 = vpop.f32.mrb[25].mxu0 }
 0x23a   : > { %v5897_v22 = vadd.f32 %v5865_v1, %v5729_v7  ;;  %v2641_v44 = vpop.f32.mrb[25].mxu1  ;;  %v5866_v3 = vpop.f32.mrb[26].mxu0 }
 0x23b   : > { %v5898_v51 = vadd.f32 %v4658_v61, %v2641_v44  ;;  %v5730_v28 = vpop.f32.mrb[26].mxu1  ;;  %v4661_v45 = vpop.f32.mrb[27].mxu0 }
 0x23c   : > { %v4747_v27 = vmax.f32 %v5897_v22, 0.0  ;;  %v5899_v53 = vadd.f32 %v5866_v3, %v5730_v28  ;;  %v2644_v21 = vpop.f32.mrb[27].mxu1 }
 0x23d   : > { %v4745_v47 = vmax.f32 %v5898_v51, 0.0  ;;  %v5900_v46 = vadd.f32 %v4661_v45, %v2644_v21 }
 0x23e   : > { %4780 = vst.msk [vmem:[%s8033_s18 + $0xd0] sm:$0xff] %vm4753_vm8, %v4747_v27  ;;  %v4748_v15 = vmax.f32 %v5899_v53, 0.0 }
 0x23f   : > { %4778 = vst.msk [vmem:[%s8033_s18 + $0xc0] sm:$0xff] %vm4753_vm8, %v4745_v47  ;;  %v4746_v60 = vmax.f32 %v5900_v46, 0.0 }
 0x240   : > { %4781 = vst.msk [vmem:[%s8033_s18 + $0xd8] sm:$0xff] %vm4753_vm8, %v4748_v15  ;;  %v5869_v20 = vpop.f32.mrb[28].mxu0 }
 0x241   : > { %4779 = vst.msk [vmem:[%s8033_s18 + $0xc8] sm:$0xff] %vm4753_vm8, %v4746_v60  ;;  %v5733_v42 = vpop.f32.mrb[28].mxu1  ;;  %v4674_v33 = vpop.f32.mrb[29].mxu0 }
 0x242   : > { %v5901_v12 = vadd.f32 %v5869_v20, %v5733_v42  ;;  %v2657_v31 = vpop.f32.mrb[29].mxu1  ;;  %v5870_v57 = vpop.f32.mrb[30].mxu0 }
 0x243   : > { %v5902_v8 = vadd.f32 %v4674_v33, %v2657_v31  ;;  %v5734_v48 = vpop.f32.mrb[30].mxu1  ;;  %v4677_v62 = vpop.f32.mrb[31].mxu0 }
 0x244   : > { %v4751_v56 = vmax.f32 %v5901_v12, 0.0  ;;  %v5903_v40 = vadd.f32 %v5870_v57, %v5734_v48  ;;  %v2660_v13 = vpop.f32.mrb[31].mxu1 }
 0x245   : > { %v4749_v17 = vmax.f32 %v5902_v8, 0.0  ;;  %v5904_v30 = vadd.f32 %v4677_v62, %v2660_v13 }
 0x246   : > { %4784 = vst.msk [vmem:[%s8033_s18 + $0xf0] sm:$0xff] %vm4753_vm8, %v4751_v56  ;;  %v4752_v9 = vmax.f32 %v5903_v40, 0.0 }
 0x247   : > { %4782 = vst.msk [vmem:[%s8033_s18 + $0xe0] sm:$0xff] %vm4753_vm8, %v4749_v17  ;;  %v4750_v14 = vmax.f32 %v5904_v30, 0.0 }
 0x248   : > { %4785 = vst.msk [vmem:[%s8033_s18 + $0xf8] sm:$0xff] %vm4753_vm8, %v4752_v9 }
 0x249   : > { %4783 = vst.msk [vmem:[%s8033_s18 + $0xe8] sm:$0xff] %vm4753_vm8, %v4750_v14 }
 0x24a PF: > { %s12_s11 = sadd.s32 1, %s6291_s11   ;;  %s8178_s9 = smov %s6287_s10 }
 0x24b   : > { %p9_p5 = scmp.ge.s32.totalorder %s12_s11, 4   ;;  %s8179_s10 = smov %s8181_s12 }
 0x24d   :  { %11 = sbr.rel (!%p9_p5) target bundleno = 2 (0x2), region = 60 }

</bundles_post_ra>
